<compile_context>
chip_gen: v7x
topology: tpu7x:2x2x1
jax: 0.10.0
libtpu: 0.0.40
codegen_flags: <defaults>
</compile_context>

<pallas_src>
import functools
import math

import jax
import jax.numpy as jnp
from jax import lax
from jax.experimental import pallas as pl
from jax.experimental.pallas import tpu as pltpu


def _default_vmem_limit_bytes():
    """Per-generation scoped-VMEM limit (~3/4 of physical, clamped 32..100 MiB)."""
    cap = None
    try:
        info = pltpu.get_tpu_info()
        cap = getattr(info, "vmem_capacity_bytes", None)
    except Exception:
        cap = None
    if not cap:
        cap = 64 * 1024 * 1024  # conservative default (v7x physical per-TC)
    lim = int(cap) * 3 // 4
    return max(32 * 1024 * 1024, min(lim, 100 * 1024 * 1024))


def _pick_row_tiles(oh, ow):
    """Largest row-tile count T (T | OH) keeping tiles sublane-aligned and >=128 rows."""
    best = 1
    for t in range(1, oh + 1):
        if oh % t:
            continue
        mt = (oh // t) * ow
        if mt % 8 or mt < 128:
            continue
        best = t
    return best


def _conv_stats_kernel(x_ref, w_ref, conv_ref, sum_ref, sq_ref, patch_ref, *,
                       stride, dilation, kh_size, kw_size, th, out_w, cin):
    """One (sample, row-tile): im2col conv + per-channel partial BN stats.

    x_ref:     [1, Hp, Wp, Cin]       padded sample (native dtype, resident over t)
    w_ref:     [KH*KW*Cin, Cout]      im2col weight matrix (native dtype)
    conv_ref:  [1, Mt, Cout]          conv output tile (input dtype)
    sum_ref:   [1, 1, Cout]           f32 per-channel sum over the tile
    sq_ref:    [1, 1, Cout]           f32 per-channel sum of squares
    patch_ref: [Mt, KH*KW*Cin]        small VMEM staging buffer for the patch
    """
    t = pl.program_id(1)
    mt = th * out_w
    row0 = pl.multiple_of(t * (th * stride), th * stride)

    # Build the [Mt, KH*KW*Cin] im2col patch from ref-level (strided) tap slices.
    for kh in range(kh_size):
        for kw in range(kw_size):
            h0 = row0 + kh * dilation
            w0 = kw * dilation
            if stride == 1:
                hsl, wsl = pl.ds(h0, th), pl.ds(w0, out_w)
            else:
                hsl, wsl = pl.ds(h0, th, stride), pl.ds(w0, out_w, stride)
            tap = x_ref[0, hsl, wsl, :]                       # [th, ow, Cin]
            c0 = (kh * kw_size + kw) * cin
            patch_ref[:, c0:c0 + cin] = tap.reshape(mt, cin)

    # Single MXU matmul, contraction depth K = KH*KW*Cin, f32 accumulation.
    acc = jnp.dot(patch_ref[...], w_ref[...],
                  preferred_element_type=jnp.float32)          # [Mt, Cout] f32

    conv_ref[0] = acc.astype(conv_ref.dtype)
    # One-pass stats from the f32 accumulator (stats stay f32-exact even if the
    # stored conv intermediate is bf16).
    sum_ref[0] = jnp.sum(acc, axis=0, keepdims=True)
    sq_ref[0] = jnp.sum(acc * acc, axis=0, keepdims=True)


def _bn_apply_kernel(y_ref, scale_ref, shift_ref, o_ref):
    """y_ref: [1, TMt, Cout]; scale/shift: [1, Cout] f32; o_ref: [1, Cout, TMt].

    Applies y*scale + shift and writes the NCHW-oriented tile directly
    (fuses the channel-un-pad and NHWC->NCHW transpose into the kernel).
    """
    y = y_ref[0].astype(jnp.float32)                           # [TMt, Cout]
    y = y * scale_ref[...] + shift_ref[...]
    o_ref[0] = y.T.astype(o_ref.dtype)                         # [Cout, TMt]


def convbn_forward(x_nchw, weight_oihw, gamma, beta, *,
                   stride, dilation, eps=1e-5):
    N, Cin, H, W = x_nchw.shape
    Cout, _, KH, KW = weight_oihw.shape

    # TF-style dynamic SAME padding (conv2dSame ignores its static `pad` arg).
    oh = -(-H // stride)
    ow = -(-W // stride)
    pad_h = max((oh - 1) * stride + (KH - 1) * dilation + 1 - H, 0)
    pad_w = max((ow - 1) * stride + (KW - 1) * dilation + 1 - W, 0)

    # NCHW -> NHWC + spatial SAME pad: one XLA copy of the input.
    # TODO(synk): fold SAME padding + layout into the kernel DMA (halo tiles)
    # to remove this input-sized HBM round trip.
    x = jnp.transpose(x_nchw, (0, 2, 3, 1))
    x = jnp.pad(x, ((0, 0),
                    (pad_h // 2, pad_h - pad_h // 2),
                    (pad_w // 2, pad_w - pad_w // 2),
                    (0, 0)))
    hp, wp = x.shape[1], x.shape[2]

    # OIHW -> [KH*KW*Cin, Cout] im2col weight matrix (k ordered (kh, kw, cin)).
    # TODO(synk): optional opt-in bf16 cast of x/w for f32 models on v6e/v7x
    # (raises MXU throughput but changes numerics, so not done by default).
    w2 = jnp.transpose(weight_oihw, (2, 3, 1, 0)).reshape(KH * KW * Cin, Cout)
    w2 = w2.astype(x.dtype)

    m_total = oh * ow
    t_tiles = _pick_row_tiles(oh, ow)
    th = oh // t_tiles
    mt = th * ow
    k_dim = KH * KW * Cin

    cparams = pltpu.CompilerParams(
        dimension_semantics=("parallel", "parallel"),
        vmem_limit_bytes=_default_vmem_limit_bytes())

    conv_kernel = functools.partial(
        _conv_stats_kernel, stride=stride, dilation=dilation,
        kh_size=KH, kw_size=KW, th=th, out_w=ow, cin=Cin)

    # Pass 1: conv (stored flat as [N, OH*OW, Cout], input dtype, un-padded Cout)
    #         + per-tile partial BN stats.
    conv_flat, psum, psq = pl.pallas_call(
        conv_kernel,
        grid=(N, t_tiles),
        in_specs=[
            pl.BlockSpec((1, hp, wp, Cin), lambda n, t: (n, 0, 0, 0)),
            pl.BlockSpec((k_dim, Cout), lambda n, t: (0, 0)),
        ],
        out_specs=(
            pl.BlockSpec((1, mt, Cout), lambda n, t: (n, t, 0)),
            pl.BlockSpec((1, 1, Cout), lambda n, t: (n * t_tiles + t, 0, 0)),
            pl.BlockSpec((1, 1, Cout), lambda n, t: (n * t_tiles + t, 0, 0)),
        ),
        out_shape=(
            jax.ShapeDtypeStruct((N, m_total, Cout), x.dtype),
            jax.ShapeDtypeStruct((N * t_tiles, 1, Cout), jnp.float32),
            jax.ShapeDtypeStruct((N * t_tiles, 1, Cout), jnp.float32),
        ),
        scratch_shapes=[pltpu.VMEM((mt, k_dim), x.dtype)],
        compiler_params=cparams,
    )(x, w2)

    # Tiny per-channel BN-stat finalization in plain JAX (length-Cout vectors).
    count = float(N * m_total)
    total_sum = jnp.sum(psum, axis=(0, 1))
    total_sq = jnp.sum(psq, axis=(0, 1))
    mean = total_sum / count
    # TODO(synk): E[x^2]-E[x]^2 can cancel when |mean| >> std; switch to a
    # shifted/Welford accumulation if such channel distributions show up.
    var = jnp.maximum(total_sq / count - mean * mean, 0.0)      # biased variance
    inv = lax.rsqrt(var + eps)
    gamma32 = gamma.astype(jnp.float32)
    beta32 = beta.astype(jnp.float32)
    scale = (gamma32 * inv).reshape(1, Cout)
    shift = (beta32 - mean * gamma32 * inv).reshape(1, Cout)

    # Pass 2: y = conv*scale + shift, written directly in NCHW orientation.
    tmt = m_total if (m_total % 128) else min(m_total, 1024)
    out_flat = pl.pallas_call(
        _bn_apply_kernel,
        grid=(N, pl.cdiv(m_total, tmt)),
        in_specs=[
            pl.BlockSpec((1, tmt, Cout), lambda n, j: (n, j, 0)),
            pl.BlockSpec((1, Cout), lambda n, j: (0, 0)),
            pl.BlockSpec((1, Cout), lambda n, j: (0, 0)),
        ],
        out_specs=pl.BlockSpec((1, Cout, tmt), lambda n, j: (n, 0, j)),
        out_shape=jax.ShapeDtypeStruct((N, Cout, m_total), x_nchw.dtype),
        compiler_params=cparams,
    )(conv_flat, scale, shift)

    # Free row-major reshape: (N, Cout, OH*OW) -> (N, Cout, OH, OW), already NCHW.
    return out_flat.reshape(N, Cout, oh, ow)


if __name__ == "__main__":
    key = jax.random.PRNGKey(0)
    N, Cin, H, W = 2, 4, 16, 16
    Cout, K, stride, dil = 8, 3, 1, 1

    kx, kw = jax.random.split(key)
    x = jax.random.normal(kx, (N, Cin, H, W), jnp.float32)

    # PyTorch init: weight ~ N(0, sqrt(2 / (kh*kw*out_channels))), no bias;
    # BN: gamma = 1, beta = 0.
    fan = K * K * Cout
    w = jax.random.normal(kw, (Cout, Cin, K, K), jnp.float32) * math.sqrt(2.0 / fan)
    gamma = jnp.ones((Cout,), jnp.float32)
    beta = jnp.zeros((Cout,), jnp.float32)

    y = convbn_forward(x, w, gamma, beta, stride=stride, dilation=dil)
    y = jax.block_until_ready(y)

    # Reference check (plain JAX conv + train-mode BN).
    ref_conv = lax.conv_general_dilated(
        x, w, window_strides=(stride, stride), padding="SAME",
        rhs_dilation=(dil, dil),
        dimension_numbers=("NCHW", "OIHW", "NCHW"))
    m = ref_conv.mean(axis=(0, 2, 3), keepdims=True)
    v = ((ref_conv - m) ** 2).mean(axis=(0, 2, 3), keepdims=True)
    ref = (ref_conv - m) * lax.rsqrt(v + 1e-5)
    assert jnp.allclose(y, ref, atol=1e-4, rtol=1e-4), "mismatch vs reference"

    print("KERNEL_OK")
</pallas_src>

<mosaic_0001>
module attributes {stable_mosaic.version = 11 : i64} {
  func.func @_conv_stats_kernel(%arg0: i32, %arg1: i32, %arg2: memref<1x18x18x4xf32, #tpu.memory_space<vmem>>, %arg3: memref<36x8xf32, #tpu.memory_space<vmem>>, %arg4: memref<1x128x8xf32, #tpu.memory_space<vmem>>, %arg5: memref<1x1x8xf32, #tpu.memory_space<vmem>>, %arg6: memref<1x1x8xf32, #tpu.memory_space<vmem>>, %arg7: memref<128x36xf32, #tpu.memory_space<vmem>>) attributes {dimension_semantics = [#tpu.dimension_semantics<parallel>, #tpu.dimension_semantics<parallel>], iteration_bounds = array<i64: 2, 2>, scalar_prefetch = 0 : i64, scratch_operands = 1 : i64, tpu.core_type = #tpu.core_type<tc>, window_params = [{transform_indices = @transform_0, window_bounds = array<i64: 1, 18, 18, 4>}, {pipeline_mode = #tpu.pipeline_mode<synchronous>, transform_indices = @transform_1, window_bounds = array<i64: 36, 8>}, {transform_indices = @transform_2, window_bounds = array<i64: 1, 128, 8>}, {transform_indices = @transform_3, window_bounds = array<i64: 1, 1, 8>}, {transform_indices = @transform_4, window_bounds = array<i64: 1, 1, 8>}]} {
    %c8_i32 = arith.constant 8 : i32
    %0 = arith.muli %arg1, %c8_i32 : i32
    %1 = tpu.assume_multiple %0, 8 : i32
    %c0_i32 = arith.constant 0 : i32
    %2 = arith.addi %1, %c0_i32 : i32
    %c0 = arith.constant 0 : index
    %3 = arith.index_cast %2 : i32 to index
    %c0_0 = arith.constant 0 : index
    %c0_1 = arith.constant 0 : index
    %4 = vector.load %arg2[%c0, %3, %c0_0, %c0_1] : memref<1x18x18x4xf32, #tpu.memory_space<vmem>>, vector<1x8x16x4xf32>
    %5 = vector.shape_cast %4 : vector<1x8x16x4xf32> to vector<8x16x4xf32>
    %6 = vector.shape_cast %5 : vector<8x16x4xf32> to vector<128x4xf32>
    %c0_2 = arith.constant 0 : index
    %c0_3 = arith.constant 0 : index
    %7 = vector.load %arg7[%c0_2, %c0_3] : memref<128x36xf32, #tpu.memory_space<vmem>>, vector<128x4xf32>
    tpu.vector_store %arg7[%c0_2, %c0_3], %6 {strides = array<i32>} : memref<128x36xf32, #tpu.memory_space<vmem>>, vector<128x4xf32>,
    %c0_i32_4 = arith.constant 0 : i32
    %8 = arith.addi %1, %c0_i32_4 : i32
    %c0_5 = arith.constant 0 : index
    %9 = arith.index_cast %8 : i32 to index
    %c1 = arith.constant 1 : index
    %c0_6 = arith.constant 0 : index
    %10 = vector.load %arg2[%c0_5, %9, %c1, %c0_6] : memref<1x18x18x4xf32, #tpu.memory_space<vmem>>, vector<1x8x16x4xf32>
    %11 = vector.shape_cast %10 : vector<1x8x16x4xf32> to vector<8x16x4xf32>
    %12 = vector.shape_cast %11 : vector<8x16x4xf32> to vector<128x4xf32>
    %c0_7 = arith.constant 0 : index
    %c4 = arith.constant 4 : index
    %13 = vector.load %arg7[%c0_7, %c4] : memref<128x36xf32, #tpu.memory_space<vmem>>, vector<128x4xf32>
    tpu.vector_store %arg7[%c0_7, %c4], %12 {strides = array<i32>} : memref<128x36xf32, #tpu.memory_space<vmem>>, vector<128x4xf32>,
    %c0_i32_8 = arith.constant 0 : i32
    %14 = arith.addi %1, %c0_i32_8 : i32
    %c0_9 = arith.constant 0 : index
    %15 = arith.index_cast %14 : i32 to index
    %c2 = arith.constant 2 : index
    %c0_10 = arith.constant 0 : index
    %16 = vector.load %arg2[%c0_9, %15, %c2, %c0_10] : memref<1x18x18x4xf32, #tpu.memory_space<vmem>>, vector<1x8x16x4xf32>
    %17 = vector.shape_cast %16 : vector<1x8x16x4xf32> to vector<8x16x4xf32>
    %18 = vector.shape_cast %17 : vector<8x16x4xf32> to vector<128x4xf32>
    %c0_11 = arith.constant 0 : index
    %c8 = arith.constant 8 : index
    %19 = vector.load %arg7[%c0_11, %c8] : memref<128x36xf32, #tpu.memory_space<vmem>>, vector<128x4xf32>
    tpu.vector_store %arg7[%c0_11, %c8], %18 {strides = array<i32>} : memref<128x36xf32, #tpu.memory_space<vmem>>, vector<128x4xf32>,
    %c1_i32 = arith.constant 1 : i32
    %20 = arith.addi %1, %c1_i32 : i32
    %c0_12 = arith.constant 0 : index
    %21 = arith.index_cast %20 : i32 to index
    %c0_13 = arith.constant 0 : index
    %c0_14 = arith.constant 0 : index
    %22 = vector.load %arg2[%c0_12, %21, %c0_13, %c0_14] : memref<1x18x18x4xf32, #tpu.memory_space<vmem>>, vector<1x8x16x4xf32>
    %23 = vector.shape_cast %22 : vector<1x8x16x4xf32> to vector<8x16x4xf32>
    %24 = vector.shape_cast %23 : vector<8x16x4xf32> to vector<128x4xf32>
    %c0_15 = arith.constant 0 : index
    %c12 = arith.constant 12 : index
    %25 = vector.load %arg7[%c0_15, %c12] : memref<128x36xf32, #tpu.memory_space<vmem>>, vector<128x4xf32>
    tpu.vector_store %arg7[%c0_15, %c12], %24 {strides = array<i32>} : memref<128x36xf32, #tpu.memory_space<vmem>>, vector<128x4xf32>,
    %c1_i32_16 = arith.constant 1 : i32
    %26 = arith.addi %1, %c1_i32_16 : i32
    %c0_17 = arith.constant 0 : index
    %27 = arith.index_cast %26 : i32 to index
    %c1_18 = arith.constant 1 : index
    %c0_19 = arith.constant 0 : index
    %28 = vector.load %arg2[%c0_17, %27, %c1_18, %c0_19] : memref<1x18x18x4xf32, #tpu.memory_space<vmem>>, vector<1x8x16x4xf32>
    %29 = vector.shape_cast %28 : vector<1x8x16x4xf32> to vector<8x16x4xf32>
    %30 = vector.shape_cast %29 : vector<8x16x4xf32> to vector<128x4xf32>
    %c0_20 = arith.constant 0 : index
    %c16 = arith.constant 16 : index
    %31 = vector.load %arg7[%c0_20, %c16] : memref<128x36xf32, #tpu.memory_space<vmem>>, vector<128x4xf32>
    tpu.vector_store %arg7[%c0_20, %c16], %30 {strides = array<i32>} : memref<128x36xf32, #tpu.memory_space<vmem>>, vector<128x4xf32>,
    %c1_i32_21 = arith.constant 1 : i32
    %32 = arith.addi %1, %c1_i32_21 : i32
    %c0_22 = arith.constant 0 : index
    %33 = arith.index_cast %32 : i32 to index
    %c2_23 = arith.constant 2 : index
    %c0_24 = arith.constant 0 : index
    %34 = vector.load %arg2[%c0_22, %33, %c2_23, %c0_24] : memref<1x18x18x4xf32, #tpu.memory_space<vmem>>, vector<1x8x16x4xf32>
    %35 = vector.shape_cast %34 : vector<1x8x16x4xf32> to vector<8x16x4xf32>
    %36 = vector.shape_cast %35 : vector<8x16x4xf32> to vector<128x4xf32>
    %c0_25 = arith.constant 0 : index
    %c20 = arith.constant 20 : index
    %37 = vector.load %arg7[%c0_25, %c20] : memref<128x36xf32, #tpu.memory_space<vmem>>, vector<128x4xf32>
    tpu.vector_store %arg7[%c0_25, %c20], %36 {strides = array<i32>} : memref<128x36xf32, #tpu.memory_space<vmem>>, vector<128x4xf32>,
    %c2_i32 = arith.constant 2 : i32
    %38 = arith.addi %1, %c2_i32 : i32
    %c0_26 = arith.constant 0 : index
    %39 = arith.index_cast %38 : i32 to index
    %c0_27 = arith.constant 0 : index
    %c0_28 = arith.constant 0 : index
    %40 = vector.load %arg2[%c0_26, %39, %c0_27, %c0_28] : memref<1x18x18x4xf32, #tpu.memory_space<vmem>>, vector<1x8x16x4xf32>
    %41 = vector.shape_cast %40 : vector<1x8x16x4xf32> to vector<8x16x4xf32>
    %42 = vector.shape_cast %41 : vector<8x16x4xf32> to vector<128x4xf32>
    %c0_29 = arith.constant 0 : index
    %c24 = arith.constant 24 : index
    %43 = vector.load %arg7[%c0_29, %c24] : memref<128x36xf32, #tpu.memory_space<vmem>>, vector<128x4xf32>
    tpu.vector_store %arg7[%c0_29, %c24], %42 {strides = array<i32>} : memref<128x36xf32, #tpu.memory_space<vmem>>, vector<128x4xf32>,
    %c2_i32_30 = arith.constant 2 : i32
    %44 = arith.addi %1, %c2_i32_30 : i32
    %c0_31 = arith.constant 0 : index
    %45 = arith.index_cast %44 : i32 to index
    %c1_32 = arith.constant 1 : index
    %c0_33 = arith.constant 0 : index
    %46 = vector.load %arg2[%c0_31, %45, %c1_32, %c0_33] : memref<1x18x18x4xf32, #tpu.memory_space<vmem>>, vector<1x8x16x4xf32>
    %47 = vector.shape_cast %46 : vector<1x8x16x4xf32> to vector<8x16x4xf32>
    %48 = vector.shape_cast %47 : vector<8x16x4xf32> to vector<128x4xf32>
    %c0_34 = arith.constant 0 : index
    %c28 = arith.constant 28 : index
    %49 = vector.load %arg7[%c0_34, %c28] : memref<128x36xf32, #tpu.memory_space<vmem>>, vector<128x4xf32>
    tpu.vector_store %arg7[%c0_34, %c28], %48 {strides = array<i32>} : memref<128x36xf32, #tpu.memory_space<vmem>>, vector<128x4xf32>,
    %c2_i32_35 = arith.constant 2 : i32
    %50 = arith.addi %1, %c2_i32_35 : i32
    %c0_36 = arith.constant 0 : index
    %51 = arith.index_cast %50 : i32 to index
    %c2_37 = arith.constant 2 : index
    %c0_38 = arith.constant 0 : index
    %52 = vector.load %arg2[%c0_36, %51, %c2_37, %c0_38] : memref<1x18x18x4xf32, #tpu.memory_space<vmem>>, vector<1x8x16x4xf32>
    %53 = vector.shape_cast %52 : vector<1x8x16x4xf32> to vector<8x16x4xf32>
    %54 = vector.shape_cast %53 : vector<8x16x4xf32> to vector<128x4xf32>
    %c0_39 = arith.constant 0 : index
    %c32 = arith.constant 32 : index
    %55 = vector.load %arg7[%c0_39, %c32] : memref<128x36xf32, #tpu.memory_space<vmem>>, vector<128x4xf32>
    tpu.vector_store %arg7[%c0_39, %c32], %54 {strides = array<i32>} : memref<128x36xf32, #tpu.memory_space<vmem>>, vector<128x4xf32>,
    %c0_40 = arith.constant 0 : index
    %c0_41 = arith.constant 0 : index
    %56 = vector.load %arg7[%c0_40, %c0_41] : memref<128x36xf32, #tpu.memory_space<vmem>>, vector<128x36xf32>
    %c0_42 = arith.constant 0 : index
    %c0_43 = arith.constant 0 : index
    %57 = vector.load %arg3[%c0_42, %c0_43] : memref<36x8xf32, #tpu.memory_space<vmem>>, vector<36x8xf32>
    %cst = arith.constant dense<0.000000e+00> : vector<128x8xf32>
    %58 = tpu.matmul %56, %57, %cst {dimension_numbers = #tpu.dot_dimension_numbers<[1], [0], [0], [1], [0, 0, 1, 1], [], []>} : vector<128x36xf32>, vector<36x8xf32>, vector<128x8xf32> -> vector<128x8xf32>
    %c0_44 = arith.constant 0 : index
    %c0_45 = arith.constant 0 : index
    %c0_46 = arith.constant 0 : index
    %59 = vector.load %arg4[%c0_44, %c0_45, %c0_46] : memref<1x128x8xf32, #tpu.memory_space<vmem>>, vector<1x128x8xf32>
    %60 = vector.shape_cast %59 : vector<1x128x8xf32> to vector<128x8xf32>
    %61 = vector.shape_cast %58 : vector<128x8xf32> to vector<1x128x8xf32>
    tpu.vector_store %arg4[%c0_44, %c0_45, %c0_46], %61 {strides = array<i32>} : memref<1x128x8xf32, #tpu.memory_space<vmem>>, vector<1x128x8xf32>,
    %cst_47 = arith.constant dense<0.000000e+00> : vector<8xf32>
    %62 = vector.multi_reduction <add>, %58, %cst_47 [0] : vector<128x8xf32> to vector<8xf32>
    %63 = vector.shape_cast %62 : vector<8xf32> to vector<1x8xf32>
    %c0_48 = arith.constant 0 : index
    %c0_49 = arith.constant 0 : index
    %c0_50 = arith.constant 0 : index
    %64 = vector.load %arg5[%c0_48, %c0_49, %c0_50] : memref<1x1x8xf32, #tpu.memory_space<vmem>>, vector<1x1x8xf32>
    %65 = vector.shape_cast %64 : vector<1x1x8xf32> to vector<1x8xf32>
    %66 = vector.shape_cast %63 : vector<1x8xf32> to vector<1x1x8xf32>
    tpu.vector_store %arg5[%c0_48, %c0_49, %c0_50], %66 {strides = array<i32>} : memref<1x1x8xf32, #tpu.memory_space<vmem>>, vector<1x1x8xf32>,
    %67 = arith.mulf %58, %58 : vector<128x8xf32>
    %cst_51 = arith.constant dense<0.000000e+00> : vector<8xf32>
    %68 = vector.multi_reduction <add>, %67, %cst_51 [0] : vector<128x8xf32> to vector<8xf32>
    %69 = vector.shape_cast %68 : vector<8xf32> to vector<1x8xf32>
    %c0_52 = arith.constant 0 : index
    %c0_53 = arith.constant 0 : index
    %c0_54 = arith.constant 0 : index
    %70 = vector.load %arg6[%c0_52, %c0_53, %c0_54] : memref<1x1x8xf32, #tpu.memory_space<vmem>>, vector<1x1x8xf32>
    %71 = vector.shape_cast %70 : vector<1x1x8xf32> to vector<1x8xf32>
    %72 = vector.shape_cast %69 : vector<1x8xf32> to vector<1x1x8xf32>
    tpu.vector_store %arg6[%c0_52, %c0_53, %c0_54], %72 {strides = array<i32>} : memref<1x1x8xf32, #tpu.memory_space<vmem>>, vector<1x1x8xf32>,
    return
  }
  func.func @transform_0(%arg0: i32, %arg1: i32) -> (i32, i32, i32, i32) {
    %c0_i32 = arith.constant 0 : i32
    %c0_i32_0 = arith.constant 0 : i32
    %c0_i32_1 = arith.constant 0 : i32
    %c0_i32_2 = arith.constant 0 : i32
    return %arg0, %c0_i32, %c0_i32_0, %c0_i32_1 : i32, i32, i32, i32
  }
  func.func @transform_1(%arg0: i32, %arg1: i32) -> (i32, i32) {
    %c0_i32 = arith.constant 0 : i32
    %c0_i32_0 = arith.constant 0 : i32
    %c0_i32_1 = arith.constant 0 : i32
    return %c0_i32, %c0_i32_0 : i32, i32
  }
  func.func @transform_2(%arg0: i32, %arg1: i32) -> (i32, i32, i32) {
    %c0_i32 = arith.constant 0 : i32
    %c0_i32_0 = arith.constant 0 : i32
    return %arg0, %arg1, %c0_i32 : i32, i32, i32
  }
  func.func @transform_3(%arg0: i32, %arg1: i32) -> (i32, i32, i32) {
    %c2_i32 = arith.constant 2 : i32
    %0 = arith.muli %arg0, %c2_i32 : i32
    %1 = arith.addi %0, %arg1 : i32
    %c0_i32 = arith.constant 0 : i32
    %c0_i32_0 = arith.constant 0 : i32
    %c0_i32_1 = arith.constant 0 : i32
    return %1, %c0_i32, %c0_i32_0 : i32, i32, i32
  }
  func.func @transform_4(%arg0: i32, %arg1: i32) -> (i32, i32, i32) {
    %c2_i32 = arith.constant 2 : i32
    %0 = arith.muli %arg0, %c2_i32 : i32
    %1 = arith.addi %0, %arg1 : i32
    %c0_i32 = arith.constant 0 : i32
    %c0_i32_0 = arith.constant 0 : i32
    %c0_i32_1 = arith.constant 0 : i32
    return %1, %c0_i32, %c0_i32_0 : i32, i32, i32
  }
}

</mosaic_0001>

<bundles_post_ra>
// kernel: tpu_custom_call.1
= control target key start
LH: loop header
LB: loop body
LE: loop exit
PB: predicated region body
PF: predicated region fallthrough
CT: control target
= control target key end

     0   :  { %10 = vsyncpa [#allocation4], 0  ;;  %s2711_s0 = inlined_call_operand.vmem [shape: f32[2,18,18,4], index: 0, kind: input, shape index: {}]   ;;  %s2712_s1 = inlined_call_operand.vmem [shape: f32[36,8], index: 1, kind: input, shape index: {}]   ;;  %s2713_s2 = inlined_call_operand.vmem [shape: f32[2,256,8], index: 2, kind: output, shape index: {0}]   ;;  %s2714_s3 = inlined_call_operand.hbm [shape: f32[4,1,8], index: 3, kind: output, shape index: {1}]   ;;  %s2715_s4 = inlined_call_operand.hbm [shape: f32[4,1,8], index: 4, kind: output, shape index: {2}]  }
   0x1   :  { %12 = vsyncpa [#allocation4 + $0x1], 0 }
   0x2   :  { %13 = vsyncpa [#allocation6], 0 }
   0x3   :  { %15 = vsyncpa [#allocation6 + $0x1], 0  ;;  %s2046_s15 = smov 0   ;;  %s2048_s16 = smov 0  }
   0x4   :  { %s2050_s17 = smov 0   ;;  %s2052_s18 = smov 0  }
   0x5   :  { %s2054_s19 = smov 0   ;;  %s2056_s20 = smov 0  }
   0x6   :  { %s2058_s21 = smov 0   ;;  %s2060_s22 = smov 0  }
   0x7 LB: > { %s1591_s23 = sadd.s32 4294967295, %s2009_s22   ;;  %s30_s24 = sadd.s32 1, %s2001_s20  ;;  %s2009_s22 = sphi %s2060_s22, %s21_s22   ;;  %s2005_s21 = sphi %s2058_s21, %s2727_s21   ;;  %s2001_s20 = sphi %s2056_s20, %s2726_s20   ;;  %s1997_s19 = sphi %s2054_s19, %s2725_s19   ;;  %s1993_s18 = sphi %s2052_s18, %s2724_s18   ;;  %s1989_s17 = sphi %s2050_s17, %s2723_s17   ;;  %s1985_s16 = sphi %s2048_s16, %s2722_s16   ;;  %s1981_s15 = sphi %s2046_s15, %s2721_s15  }
   0x8   : > { %s33_s25 = sadd.s32 1, %s2005_s21  ;;  %p31_p0 = scmp.ge.s32.totalorder %s30_s24, 2 }
   0x9   : > { %s1593_s26 = sshll.u32 %s2005_s21, 1  ;;  %s1592_s27 = sadd.s32 4294967294, %s2009_s22  }
   0xa   : > { %s113_s28 = sadd.s32 %s2001_s20, %s1593_s26  ;;  %s2729_s24 = smov (%p31_p0, %s30_s24), 0 }
   0xb   : > { %s2731_s25 = smov (!%p31_p0, %s33_s25), %s2005_s21  ;;  %p129_p1 = scmp.ne.s32.totalorder %s1989_s17, %s1985_s16 }
   0xc   : > { %p130_p2 = scmp.eq.s32.totalorder %s1591_s23, 3  ;;  %p35_p3 = scmp.ge.s32.totalorder %s2731_s25, 2 }
   0xd   : > { %p135_p4 = scmp.ne.s32.totalorder %s1985_s16, %s1981_s15  ;;  %p136_p6 = scmp.eq.s32.totalorder %s1592_s27, 3 }
   0xe   : > { %p2099_p5 = por %p130_p2, %p129_p1  ;;  %s2733_s25 = smov (%p35_p3, %s2731_s25), 0 }
   0xf   : > { %p2105_p7 = por %p136_p6, %p135_p4  ;;  %p1599_p8 = scmp.ge.s32.totalorder %s2009_s22, 1 }
  0x10   : > { %s1594_s5 = sshll.u32 %s2733_s25, 1  ;;  %p195_p9 = scmp.lt.s32.totalorder %s2009_s22, 5 }
  0x11   : > { %s115_s6 = sadd.s32 %s1594_s5, %s2729_s24  ;;  %s119_s7 = sadd.s32 1, %s1989_s17 }
  0x12   : > { %s116_s8 = ssub.s32 %s113_s28, %s115_s6  ;;  %p196_p10 = pnand %p1599_p8, %p195_p9 }
  0x13   : > { %p117_p11 = scmp.eq.s32.totalorder %s116_s8, 0  ;;  %p233_p12 = scmp.lt.s32.totalorder (!%p196_p10), %s1997_s19, 1  ;;  %vm271_vm0 = vcmask (!%p196_p10), 31744   ;;  %v1086_v22 = vld [vmem:[%s2712_s1] sm:$0xff] (!%p196_p10)  ;;  %v1087_v23 = vld [vmem:[%s2712_s1 + $0x8] sm:$0xff] (!%p196_p10)  ;;  %v1088_v26 = vld [vmem:[%s2712_s1 + $0x10] sm:$0xff] (!%p196_p10) }
  0x14   : > { %199 = sbr.rel (%p196_p10) target bundleno = 678 (0x2a6), region = 28  ;;  %s2011_s27 = smov (!%p196_p10), 8   ;;  %v1784_v25 = vpack.c.bf16 (!%p196_p10), %v1087_v23, %v1086_v22  ;;  %v1089_v27 = vld [vmem:[%s2712_s1 + $0x18] sm:$0xff] (!%p196_p10)  ;;  %v1090_v31 = vld [vmem:[%s2712_s1 + $0x20] sm:$0xf] (!%p196_p10)  ;;  %vm1140_vm1 = vcmask (!%p196_p10), 1043456  }
  0x15   : > { %s2115_s9 = scalar_select %p117_p11, %s1989_s17, %s119_s7  }
  0x16   : > { %s1605_s11 = smul.u32 (!%p196_p10), 192, %s1993_s18  ;;  %s2012_s28 = smov (!%p196_p10), 4   ;;  %1785 = vmatprep.subr.bf16.mxu0 (!%p196_p10), %v1784_v25  ;;  %1792 = vmatprep.subr.bf16.mxu1 (!%p196_p10), %v1784_v25  ;;  %v1788_v28 = vpack.c.bf16 (!%p196_p10), %v1089_v27, %v1088_v26  ;;  %vm368_vm2 = vcmask (!%p196_p10), 64544   ;;  %vm465_vm3 = vcmask (!%p196_p10), 97344   ;;  %vm565_vm4 = vcmask (!%p196_p10), 130144  }
  0x17   : > { %s2013_s5 = smov (!%p196_p10), 12   ;;  %s2014_s6 = smov (!%p196_p10), 16   ;;  %1787 = vmatpush3.bf16.msra.mxu0 (!%p196_p10), %v1784_v25  ;;  %1795 = vmatpush3.bf16.msra.mxu1 (!%p196_p10), %v1784_v25  ;;  %vm662_vm5 = vcmask (!%p196_p10), 162944   ;;  %vm759_vm6 = vcmask (!%p196_p10), 195744   ;;  %vm859_vm7 = vcmask (!%p196_p10), 228544   ;;  %vm956_vm8 = vcmask (!%p196_p10), 261344  }
  0x18   : > { %s2015_s7 = smov (!%p196_p10), 20   ;;  %s2716_s8 = smov (!%p196_p10), 24   ;;  %1789 = vmatprep.subr.bf16.mxu0 (!%p196_p10), %v1788_v28  ;;  %1793 = vmatprep.subr.bf16.mxu1 (!%p196_p10), %v1788_v28  ;;  %vm1053_vm9 = vcmask (!%p196_p10), 294144   ;;  %vm1091_vm10 = vcmask (!%p196_p10), 293888   ;;  %vm1289_vm11 = vcmask (!%p196_p10), 64512   ;;  %vm1343_vm12 = vcmask (!%p196_p10), 57344  }
  0x19   : > { %s2720_s13 = smov (!%p196_p10), 24  }
  0x1b   : > { %s2119_s10 = scalar_select %p233_p12, %s1997_s19, 1  ;;  %1791 = vmatpush3.bf16.msra.mxu0 %v1788_v28  ;;  %1796 = vmatpush3.bf16.msra.mxu1 %v1788_v28 }
  0x1c   : > { %1758 = vmatprep.subr.msk.mxu0 %vm1140_vm1, %v1090_v31  ;;  %1794 = vmatprep.subr.msk.mxu1 %vm1140_vm1, %v1090_v31 }
  0x1d   : > { %s1798_s12 = smul.u32 432, %s2119_s10 }
  0x1f   : > { %s237_s23 = scalar_lea.vmem %s2711_s0, %s1798_s12  ;;  %1759 = vmatpush3.msk.msra.mxu0 %vm1140_vm1, %v1090_v31  ;;  %1797 = vmatpush3.msk.msra.mxu1 %vm1140_vm1, %v1090_v31 }
  0x20   : > { %s2126_s26 = scalar_lea.vmem %s237_s23, %s1605_s11  ;;  %s2017_s23 = smov 28  }
  0x21   : > { %v385_v0 = vld [vmem:[%s2126_s26 + $0x2] sm:$0xff]  ;;  %v386_v3 = vld [vmem:[%s2126_s26 + $0xa] sm:$0xff]  ;;  %v1608_v5 = vld [vmem:[%s2126_s26 + $0x18] sm:$0xff] }
  0x22   : > { %v288_v1 = vld [vmem:[%s2126_s26 + $0x1] sm:$0xff]  ;;  %417 = vrot.lane.b32.xlu1 %v385_v0, %s2011_s27  ;;  %v289_v4 = vld [vmem:[%s2126_s26 + $0x9] sm:$0xff]  ;;  %274 = vst.msk [vmem:[#allocation2 + $0x10] sm:$0xff] %vm271_vm0, %v1608_v5  ;;  %v1659_v7 = vld [vmem:[%s2126_s26 + $0x38] sm:$0xff] }
  0x23   : > { %320 = vrot.lane.b32.xlu0 %v288_v1, %s2012_s28  ;;  %v1609_v2 = vld [vmem:[%s2126_s26 + $0x20] sm:$0xff]  ;;  %v1658_v6 = vld [vmem:[%s2126_s26 + $0x30] sm:$0xff]  ;;  %277 = vst.msk [vmem:[#allocation2 + $0x28] sm:$0xff] %vm271_vm0, %v1659_v7  ;;  %v2145_v8 = vld [vmem:[%s2126_s26 + $0x48] sm:$0xff] }
  0x24   : > { %275 = vst.msk [vmem:[#allocation2 + $0x18] sm:$0xff] %vm271_vm0, %v1609_v2  ;;  %276 = vst.msk [vmem:[#allocation2 + $0x20] sm:$0xff] %vm271_vm0, %v1658_v6  ;;  %v2148_v9 = vld [vmem:[%s2126_s26 + $0x50] sm:$0xff]  ;;  %v2155_v10 = vld [vmem:[%s2126_s26 + $0x60] sm:$0xff] }
  0x25   : > { %278 = vst.msk [vmem:[#allocation2 + $0x30] sm:$0xff] %vm271_vm0, %v2145_v8  ;;  %279 = vst.msk [vmem:[#allocation2 + $0x38] sm:$0xff] %vm271_vm0, %v2148_v9  ;;  %v2158_v11 = vld [vmem:[%s2126_s26 + $0x68] sm:$0xff]  ;;  %v290_v12 = vld [vmem:[%s2126_s26 + $0x19] sm:$0xff] }
  0x26   : > { %419 = vrot.lane.b32.xlu1 %v386_v3, %s2011_s27  ;;  %280 = vst.msk [vmem:[#allocation2 + $0x40] sm:$0xff] %vm271_vm0, %v2155_v10  ;;  %281 = vst.msk [vmem:[#allocation2 + $0x48] sm:$0xff] %vm271_vm0, %v2158_v11  ;;  %v255_v13 = vld [vmem:[%s2126_s26] sm:$0xff]  ;;  %v256_v14 = vld [vmem:[%s2126_s26 + $0x8] sm:$0xff] }
  0x27   : > { %322 = vrot.lane.b32.xlu0 %v289_v4, %s2012_s28  ;;  %272 = vst.msk [vmem:[#allocation2] sm:$0xff] %vm271_vm0, %v255_v13  ;;  %273 = vst.msk [vmem:[#allocation2 + $0x8] sm:$0xff] %vm271_vm0, %v256_v14  ;;  %v2172_v15 = vld [vmem:[%s2126_s26 + $0x78] sm:$0xff]  ;;  %v2175_v16 = vld [vmem:[%s2126_s26 + $0x80] sm:$0xff] }
  0x28   : > { %282 = vst.msk [vmem:[#allocation2 + $0x50] sm:$0xff] %vm271_vm0, %v2172_v15  ;;  %283 = vst.msk [vmem:[#allocation2 + $0x58] sm:$0xff] %vm271_vm0, %v2175_v16  ;;  %v1640_v17 = vld [vmem:[%s2126_s26 + $0x1a] sm:$0xff]  ;;  %v1641_v19 = vld [vmem:[%s2126_s26 + $0x22] sm:$0xff] }
  0x29   : > { %v1625_v18 = vld [vmem:[%s2126_s26 + $0x21] sm:$0xff]  ;;  %v2191_v20 = vld [vmem:[%s2126_s26 + $0x90] sm:$0xff]  ;;  %v2207_v24 = vld [vmem:[%s2126_s26 + $0x98] sm:$0xff] }
  0x2a   : > { %519 = vrot.lane.b32.xlu1 %v1609_v2, %s2013_s5  ;;  %284 = vst.msk [vmem:[#allocation2 + $0x60] sm:$0xff] %vm271_vm0, %v2191_v20  ;;  %v1674_v21 = vld [vmem:[%s2126_s26 + $0x31] sm:$0xff]  ;;  %285 = vst.msk [vmem:[#allocation2 + $0x68] sm:$0xff] %vm271_vm0, %v2207_v24  ;;  %v1675_v30 = vld [vmem:[%s2126_s26 + $0x39] sm:$0xff] }
  0x2b   : > { %517 = vrot.lane.b32.xlu0 %v1608_v5, %s2013_s5  ;;  %v1690_v29 = vld [vmem:[%s2126_s26 + $0x32] sm:$0xff]  ;;  %v1691_v32 = vld [vmem:[%s2126_s26 + $0x3a] sm:$0xff]  ;;  %v2236_v33 = vld [vmem:[%s2126_s26 + $0xa8] sm:$0xff] }
  0x2c   : > { %286 = vst.msk [vmem:[#allocation2 + $0x70] sm:$0xff] %vm271_vm0, %v2236_v33  ;;  %v1676_v34 = vld [vmem:[%s2126_s26 + $0x49] sm:$0xff]  ;;  %v1677_v37 = vld [vmem:[%s2126_s26 + $0x51] sm:$0xff]  ;;  %v1678_v39 = vld [vmem:[%s2126_s26 + $0x61] sm:$0xff] }
  0x2d   : > { %v2248_v35 = vld [vmem:[%s2126_s26 + $0xb0] sm:$0xff]  ;;  %v1694_v40 = vld [vmem:[%s2126_s26 + $0x62] sm:$0xff]  ;;  %v1680_v49 = vld [vmem:[%s2126_s26 + $0x79] sm:$0xff] }
  0x2e   : > { %324 = vrot.lane.b32.xlu1 %v290_v12, %s2012_s28  ;;  %287 = vst.msk [vmem:[#allocation2 + $0x78] sm:$0xff] %vm271_vm0, %v2248_v35  ;;  %v1692_v36 = vld [vmem:[%s2126_s26 + $0x4a] sm:$0xff]  ;;  %v1693_v38 = vld [vmem:[%s2126_s26 + $0x52] sm:$0xff]  ;;  %v1696_v54 = vld [vmem:[%s2126_s26 + $0x7a] sm:$0xff] }
  0x2f   : > { %614 = vrot.lane.b32.xlu0 %v290_v12, %s2014_s6  ;;  %v1679_v41 = vld [vmem:[%s2126_s26 + $0x69] sm:$0xff]  ;;  %v1681_v55 = vld [vmem:[%s2126_s26 + $0x81] sm:$0xff]  ;;  %v1682_v5 = vld [vmem:[%s2126_s26 + $0x91] sm:$0xff] }
  0x30   : > { %v1695_v42 = vld [vmem:[%s2126_s26 + $0x6a] sm:$0xff]  ;;  %v1697_v60 = vld [vmem:[%s2126_s26 + $0x82] sm:$0xff]  ;;  %v1683_v12 = vld [vmem:[%s2126_s26 + $0x99] sm:$0xff] }
  0x31   : > { %v1684_v27 = vld [vmem:[%s2126_s26 + $0xa9] sm:$0xff] }
  0x32   : > { %711 = vrot.lane.b32.xlu1 %v1640_v17, %s2015_s7 }
  0x33   : > { %616 = vrot.lane.b32.xlu0 %v1625_v18, %s2014_s6 }
  0x36   : > { %421 = vrot.lane.b32.xlu1 %v1640_v17, %s2011_s27 }
  0x37   : > { %326 = vrot.lane.b32.xlu0 %v1625_v18, %s2012_s28  ;;  %v1699_v18 = vld [vmem:[%s2126_s26 + $0x9a] sm:$0xff] }
  0x3a   : > { %811 = vrot.lane.b32.xlu1 %v1658_v6, %s2716_s8 }
  0x3b   : > { %713 = vrot.lane.b32.xlu0 %v1641_v19, %s2015_s7 }
  0x3e   : > { %521 = vrot.lane.b32.xlu1 %v1658_v6, %s2013_s5 }
  0x3f   : > { %423 = vrot.lane.b32.xlu0 %v1641_v19, %s2011_s27 }
  0x42   : > { %908 = vrot.lane.b32.xlu1 %v1674_v21, %s2017_s23 }
  0x43   : > { %813 = vrot.lane.b32.xlu0 %v1659_v7, %s2716_s8  ;;  %s2018_s8 = smov 32  }
  0x46   : > { %618 = vrot.lane.b32.xlu1 %v1674_v21, %s2014_s6 }
  0x47   : > { %523 = vrot.lane.b32.xlu0 %v1659_v7, %s2013_s5 }
  0x4a   : > { %1005 = vrot.lane.b32.xlu1 %v1690_v29, %s2018_s8 }
  0x4b   : > { %910 = vrot.lane.b32.xlu0 %v1675_v30, %s2017_s23 }
  0x4e   : > { %620 = vrot.lane.b32.xlu1 %v1675_v30, %s2014_s6 }
  0x4f   : > { %328 = vrot.lane.b32.xlu0 %v1674_v21, %s2012_s28 }
  0x52   : > { %1007 = vrot.lane.b32.xlu1 %v1691_v32, %s2018_s8 }
  0x53   : > { %715 = vrot.lane.b32.xlu0 %v1690_v29, %s2015_s7 }
  0x56   : > { %425 = vrot.lane.b32.xlu1 %v1690_v29, %s2011_s27 }
  0x57   : > { %330 = vrot.lane.b32.xlu0 %v1675_v30, %s2012_s28 }
  0x5a   : > { %815 = vrot.lane.b32.xlu1 %v2145_v8, %s2720_s13 }
  0x5b   : > { %717 = vrot.lane.b32.xlu0 %v1691_v32, %s2015_s7 }
  0x5e   : > { %525 = vrot.lane.b32.xlu1 %v2145_v8, %s2013_s5 }
  0x5f   : > { %427 = vrot.lane.b32.xlu0 %v1691_v32, %s2011_s27 }
  0x62   : > { %912 = vrot.lane.b32.xlu1 %v1676_v34, %s2017_s23 }
  0x63   : > { %817 = vrot.lane.b32.xlu0 %v2148_v9, %s2720_s13 }
  0x66   : > { %622 = vrot.lane.b32.xlu1 %v1676_v34, %s2014_s6 }
  0x67   : > { %527 = vrot.lane.b32.xlu0 %v2148_v9, %s2013_s5 }
  0x6a   : > { %1009 = vrot.lane.b32.xlu1 %v1692_v36, %s2018_s8 }
  0x6b   : > { %914 = vrot.lane.b32.xlu0 %v1677_v37, %s2017_s23 }
  0x6e   : > { %624 = vrot.lane.b32.xlu1 %v1677_v37, %s2014_s6 }
  0x6f   : > { %332 = vrot.lane.b32.xlu0 %v1676_v34, %s2012_s28  ;;  %v1685_v34 = vld [vmem:[%s2126_s26 + $0xb1] sm:$0xff] }
  0x72   : > { %1011 = vrot.lane.b32.xlu1 %v1693_v38, %s2018_s8 }
  0x73   : > { %719 = vrot.lane.b32.xlu0 %v1692_v36, %s2015_s7 }
  0x76   : > { %429 = vrot.lane.b32.xlu1 %v1692_v36, %s2011_s27 }
  0x77   : > { %334 = vrot.lane.b32.xlu0 %v1677_v37, %s2012_s28 }
  0x7a   : > { %819 = vrot.lane.b32.xlu1 %v2155_v10, %s2720_s13 }
  0x7b   : > { %721 = vrot.lane.b32.xlu0 %v1693_v38, %s2015_s7 }
  0x7e   : > { %529 = vrot.lane.b32.xlu1 %v2155_v10, %s2013_s5 }
  0x7f   : > { %431 = vrot.lane.b32.xlu0 %v1693_v38, %s2011_s27 }
  0x82   : > { %916 = vrot.lane.b32.xlu1 %v1678_v39, %s2017_s23 }
  0x83   : > { %821 = vrot.lane.b32.xlu0 %v2158_v11, %s2720_s13 }
  0x86   : > { %626 = vrot.lane.b32.xlu1 %v1678_v39, %s2014_s6 }
  0x87   : > { %531 = vrot.lane.b32.xlu0 %v2158_v11, %s2013_s5  ;;  %v1698_v11 = vld [vmem:[%s2126_s26 + $0x92] sm:$0xff] }
  0x8a   : > { %1013 = vrot.lane.b32.xlu1 %v1694_v40, %s2018_s8 }
  0x8b   : > { %918 = vrot.lane.b32.xlu0 %v1679_v41, %s2017_s23 }
  0x8e   : > { %628 = vrot.lane.b32.xlu1 %v1679_v41, %s2014_s6 }
  0x8f   : > { %336 = vrot.lane.b32.xlu0 %v1678_v39, %s2012_s28 }
  0x92   : > { %1015 = vrot.lane.b32.xlu1 %v1695_v42, %s2018_s8 }
  0x93   : > { %723 = vrot.lane.b32.xlu0 %v1694_v40, %s2015_s7 }
  0x94   : > { %v418_v43 = vpop.permute.xlu1 %417 }
  0x95   : > { %v321_v44 = vpop.permute.xlu0 %320 }
  0x96   : > { %369 = vst.msk [vmem:[#allocation2] sm:$0xff] %vm368_vm2, %v321_v44  ;;  %433 = vrot.lane.b32.xlu1 %v1694_v40, %s2011_s27 }
  0x97   : > { %338 = vrot.lane.b32.xlu0 %v1679_v41, %s2012_s28  ;;  %466 = vst.msk [vmem:[#allocation2] sm:$0xff] %vm465_vm3, %v418_v43 }
  0x98   : > { %v420_v45 = vpop.permute.xlu1 %419 }
  0x99   : > { %v323_v46 = vpop.permute.xlu0 %322 }
  0x9a   : > { %370 = vst.msk [vmem:[#allocation2 + $0x8] sm:$0xff] %vm368_vm2, %v323_v46  ;;  %823 = vrot.lane.b32.xlu1 %v2172_v15, %s2720_s13 }
  0x9b   : > { %725 = vrot.lane.b32.xlu0 %v1695_v42, %s2015_s7  ;;  %467 = vst.msk [vmem:[#allocation2 + $0x8] sm:$0xff] %vm465_vm3, %v420_v45  ;;  %v1670_v45 = vld [vmem:[%s2126_s26 + $0xc0] sm:$0xff] }
  0x9c   : > { %v520_v47 = vpop.permute.xlu1 %519 }
  0x9d   : > { %v518_v48 = vpop.permute.xlu0 %517  ;;  %567 = vst.msk [vmem:[#allocation2 + $0x8] sm:$0xff] %vm565_vm4, %v520_v47 }
  0x9e   : > { %566 = vst.msk [vmem:[#allocation2] sm:$0xff] %vm565_vm4, %v518_v48  ;;  %533 = vrot.lane.b32.xlu1 %v2172_v15, %s2013_s5 }
  0x9f   : > { %435 = vrot.lane.b32.xlu0 %v1695_v42, %s2011_s27 }
  0xa0   : > { %v325_v50 = vpop.permute.xlu1 %324 }
  0xa1   : > { %v615_v51 = vpop.permute.xlu0 %614  ;;  %371 = vst.msk [vmem:[#allocation2 + $0x10] sm:$0xff] %vm368_vm2, %v325_v50  ;;  %v1671_v50 = vld [vmem:[%s2126_s26 + $0xc8] sm:$0xff] }
  0xa2   : > { %663 = vst.msk [vmem:[#allocation2] sm:$0xff] %vm662_vm5, %v615_v51  ;;  %920 = vrot.lane.b32.xlu1 %v1680_v49, %s2017_s23  ;;  %v1686_v51 = vld [vmem:[%s2126_s26 + $0xc1] sm:$0xff] }
  0xa3   : > { %825 = vrot.lane.b32.xlu0 %v2175_v16, %s2720_s13 }
  0xa4   : > { %v712_v52 = vpop.permute.xlu1 %711 }
  0xa5   : > { %v617_v53 = vpop.permute.xlu0 %616  ;;  %760 = vst.msk [vmem:[#allocation2] sm:$0xff] %vm759_vm6, %v712_v52 }
  0xa6   : > { %664 = vst.msk [vmem:[#allocation2 + $0x8] sm:$0xff] %vm662_vm5, %v617_v53  ;;  %630 = vrot.lane.b32.xlu1 %v1680_v49, %s2014_s6 }
  0xa7   : > { %535 = vrot.lane.b32.xlu0 %v2175_v16, %s2013_s5 }
  0xa8   : > { %v422_v56 = vpop.permute.xlu1 %421 }
  0xa9   : > { %v327_v57 = vpop.permute.xlu0 %326  ;;  %468 = vst.msk [vmem:[#allocation2 + $0x10] sm:$0xff] %vm465_vm3, %v422_v56 }
  0xaa   : > { %372 = vst.msk [vmem:[#allocation2 + $0x18] sm:$0xff] %vm368_vm2, %v327_v57  ;;  %1017 = vrot.lane.b32.xlu1 %v1696_v54, %s2018_s8  ;;  %v1687_v57 = vld [vmem:[%s2126_s26 + $0xc9] sm:$0xff] }
  0xab   : > { %922 = vrot.lane.b32.xlu0 %v1681_v55, %s2017_s23 }
  0xac   : > { %v812_v58 = vpop.permute.xlu1 %811 }
  0xad   : > { %v714_v59 = vpop.permute.xlu0 %713  ;;  %860 = vst.msk [vmem:[#allocation2] sm:$0xff] %vm859_vm7, %v812_v58  ;;  %v1702_v58 = vld [vmem:[%s2126_s26 + $0xc2] sm:$0xff] }
  0xae   : > { %761 = vst.msk [vmem:[#allocation2 + $0x8] sm:$0xff] %vm759_vm6, %v714_v59  ;;  %632 = vrot.lane.b32.xlu1 %v1681_v55, %s2014_s6 }
  0xaf   : > { %340 = vrot.lane.b32.xlu0 %v1680_v49, %s2012_s28 }
  0xb0   : > { %v522_v61 = vpop.permute.xlu1 %521 }
  0xb1   : > { %v424_v62 = vpop.permute.xlu0 %423  ;;  %568 = vst.msk [vmem:[#allocation2 + $0x10] sm:$0xff] %vm565_vm4, %v522_v61 }
  0xb2   : > { %469 = vst.msk [vmem:[#allocation2 + $0x18] sm:$0xff] %vm465_vm3, %v424_v62  ;;  %1019 = vrot.lane.b32.xlu1 %v1697_v60, %s2018_s8 }
  0xb3   : > { %727 = vrot.lane.b32.xlu0 %v1696_v54, %s2015_s7 }
  0xb4   : > { %v909_v63 = vpop.permute.xlu1 %908 }
  0xb5   : > { %v814_v0 = vpop.permute.xlu0 %813  ;;  %957 = vst.msk [vmem:[#allocation2] sm:$0xff] %vm956_vm8, %v909_v63 }
  0xb6   : > { %861 = vst.msk [vmem:[#allocation2 + $0x8] sm:$0xff] %vm859_vm7, %v814_v0  ;;  %437 = vrot.lane.b32.xlu1 %v1696_v54, %s2011_s27  ;;  %v1703_v0 = vld [vmem:[%s2126_s26 + $0xca] sm:$0xff] }
  0xb7   : > { %342 = vrot.lane.b32.xlu0 %v1681_v55, %s2012_s28 }
  0xb8   : > { %v619_v1 = vpop.permute.xlu1 %618 }
  0xb9   : > { %v524_v2 = vpop.permute.xlu0 %523  ;;  %665 = vst.msk [vmem:[#allocation2 + $0x10] sm:$0xff] %vm662_vm5, %v619_v1 }
  0xba   : > { %569 = vst.msk [vmem:[#allocation2 + $0x18] sm:$0xff] %vm565_vm4, %v524_v2  ;;  %827 = vrot.lane.b32.xlu1 %v2191_v20, %s2720_s13 }
  0xbb   : > { %729 = vrot.lane.b32.xlu0 %v1697_v60, %s2015_s7 }
  0xbc   : > { %v1006_v3 = vpop.permute.xlu1 %1005 }
  0xbd   : > { %v911_v4 = vpop.permute.xlu0 %910  ;;  %1054 = vst.msk [vmem:[#allocation2] sm:$0xff] %vm1053_vm9, %v1006_v3  ;;  %v1672_v3 = vld [vmem:[%s2126_s26 + $0xd8] sm:$0xff] }
  0xbe   : > { %958 = vst.msk [vmem:[#allocation2 + $0x8] sm:$0xff] %vm956_vm8, %v911_v4  ;;  %537 = vrot.lane.b32.xlu1 %v2191_v20, %s2013_s5  ;;  %v1673_v4 = vld [vmem:[%s2126_s26 + $0xe0] sm:$0xff] }
  0xbf   : > { %439 = vrot.lane.b32.xlu0 %v1697_v60, %s2011_s27 }
  0xc0   : > { %v621_v6 = vpop.permute.xlu1 %620 }
  0xc1   : > { %v329_v7 = vpop.permute.xlu0 %328  ;;  %666 = vst.msk [vmem:[#allocation2 + $0x18] sm:$0xff] %vm662_vm5, %v621_v6 }
  0xc2   : > { %373 = vst.msk [vmem:[#allocation2 + $0x20] sm:$0xff] %vm368_vm2, %v329_v7  ;;  %924 = vrot.lane.b32.xlu1 %v1682_v5, %s2017_s23  ;;  %v1688_v7 = vld [vmem:[%s2126_s26 + $0xd9] sm:$0xff] }
  0xc3   : > { %829 = vrot.lane.b32.xlu0 %v2207_v24, %s2720_s13 }
  0xc4   : > { %v1008_v8 = vpop.permute.xlu1 %1007  ;;  %v1070_v10 = vld [vmem:[#allocation2] sm:$0xff] }
  0xc5   : > { %v716_v9 = vpop.permute.xlu0 %715  ;;  %1055 = vst.msk [vmem:[#allocation2 + $0x8] sm:$0xff] %vm1053_vm9, %v1008_v8  ;;  %1760 = vmatprep.mubr.msk.f32.mxu0 %vm1091_vm10, %v1070_v10  ;;  %v1689_v8 = vld [vmem:[%s2126_s26 + $0xe1] sm:$0xff] }
  0xc6   : > { %762 = vst.msk [vmem:[#allocation2 + $0x10] sm:$0xff] %vm759_vm6, %v716_v9  ;;  %634 = vrot.lane.b32.xlu1 %v1682_v5, %s2014_s6 }
  0xc7   : > { %539 = vrot.lane.b32.xlu0 %v2207_v24, %s2013_s5 }
  0xc8   : > { %v426_v13 = vpop.permute.xlu1 %425 }
  0xc9   : > { %v331_v14 = vpop.permute.xlu0 %330  ;;  %470 = vst.msk [vmem:[#allocation2 + $0x20] sm:$0xff] %vm465_vm3, %v426_v13 }
  0xca   : > { %374 = vst.msk [vmem:[#allocation2 + $0x28] sm:$0xff] %vm368_vm2, %v331_v14  ;;  %1021 = vrot.lane.b32.xlu1 %v1698_v11, %s2018_s8 }
  0xcb   : > { %926 = vrot.lane.b32.xlu0 %v1683_v12, %s2017_s23 }
  0xcc   : > { %v816_v15 = vpop.permute.xlu1 %815  ;;  %v1071_v17 = vld [vmem:[#allocation2 + $0x8] sm:$0xff] }
  0xcd   : > { %v718_v16 = vpop.permute.xlu0 %717  ;;  %862 = vst.msk [vmem:[#allocation2 + $0x10] sm:$0xff] %vm859_vm7, %v816_v15  ;;  %1761 = vmatmul.mubr.msk.f32.vlgmr.msra.gmra.mrb[0].mxu0 %vm1091_vm10, %v1071_v17 }
  0xce   : > { %763 = vst.msk [vmem:[#allocation2 + $0x18] sm:$0xff] %vm759_vm6, %v718_v16  ;;  %636 = vrot.lane.b32.xlu1 %v1683_v12, %s2014_s6 }
  0xcf   : > { %344 = vrot.lane.b32.xlu0 %v1682_v5, %s2012_s28 }
  0xd0   : > { %v526_v19 = vpop.permute.xlu1 %525 }
  0xd1   : > { %v428_v20 = vpop.permute.xlu0 %427  ;;  %570 = vst.msk [vmem:[#allocation2 + $0x20] sm:$0xff] %vm565_vm4, %v526_v19 }
  0xd2   : > { %471 = vst.msk [vmem:[#allocation2 + $0x28] sm:$0xff] %vm465_vm3, %v428_v20  ;;  %1023 = vrot.lane.b32.xlu1 %v1699_v18, %s2018_s8 }
  0xd3   : > { %731 = vrot.lane.b32.xlu0 %v1698_v11, %s2015_s7 }
  0xd4   : > { %v913_v21 = vpop.permute.xlu1 %912 }
  0xd5   : > { %v818_v22 = vpop.permute.xlu0 %817  ;;  %959 = vst.msk [vmem:[#allocation2 + $0x10] sm:$0xff] %vm956_vm8, %v913_v21 }
  0xd6   : > { %863 = vst.msk [vmem:[#allocation2 + $0x18] sm:$0xff] %vm859_vm7, %v818_v22  ;;  %441 = vrot.lane.b32.xlu1 %v1698_v11, %s2011_s27  ;;  %v1704_v11 = vld [vmem:[%s2126_s26 + $0xda] sm:$0xff] }
  0xd7   : > { %346 = vrot.lane.b32.xlu0 %v1683_v12, %s2012_s28  ;;  %v1705_v12 = vld [vmem:[%s2126_s26 + $0xe2] sm:$0xff] }
  0xd8   : > { %v623_v23 = vpop.permute.xlu1 %622 }
  0xd9   : > { %v528_v24 = vpop.permute.xlu0 %527  ;;  %667 = vst.msk [vmem:[#allocation2 + $0x20] sm:$0xff] %vm662_vm5, %v623_v23 }
  0xda   : > { %571 = vst.msk [vmem:[#allocation2 + $0x28] sm:$0xff] %vm565_vm4, %v528_v24  ;;  %831 = vrot.lane.b32.xlu1 %v2236_v33, %s2720_s13 }
  0xdb   : > { %733 = vrot.lane.b32.xlu0 %v1699_v18, %s2015_s7 }
  0xdc   : > { %v1010_v25 = vpop.permute.xlu1 %1009 }
  0xdd   : > { %v915_v26 = vpop.permute.xlu0 %914  ;;  %1056 = vst.msk [vmem:[#allocation2 + $0x10] sm:$0xff] %vm1053_vm9, %v1010_v25 }
  0xde   : > { %960 = vst.msk [vmem:[#allocation2 + $0x18] sm:$0xff] %vm956_vm8, %v915_v26  ;;  %541 = vrot.lane.b32.xlu1 %v2236_v33, %s2013_s5  ;;  %v1700_v33 = vld [vmem:[%s2126_s26 + $0xaa] sm:$0xff] }
  0xdf   : > { %443 = vrot.lane.b32.xlu0 %v1699_v18, %s2011_s27 }
  0xe0   : > { %v625_v28 = vpop.permute.xlu1 %624 }
  0xe1   : > { %v333_v29 = vpop.permute.xlu0 %332  ;;  %668 = vst.msk [vmem:[#allocation2 + $0x28] sm:$0xff] %vm662_vm5, %v625_v28 }
  0xe2   : > { %375 = vst.msk [vmem:[#allocation2 + $0x30] sm:$0xff] %vm368_vm2, %v333_v29  ;;  %928 = vrot.lane.b32.xlu1 %v1684_v27, %s2017_s23 }
  0xe3   : > { %833 = vrot.lane.b32.xlu0 %v2248_v35, %s2720_s13 }
  0xe4   : > { %v1012_v30 = vpop.permute.xlu1 %1011  ;;  %v1072_v32 = vld [vmem:[#allocation2 + $0x10] sm:$0xff] }
  0xe5   : > { %v720_v31 = vpop.permute.xlu0 %719  ;;  %1057 = vst.msk [vmem:[#allocation2 + $0x18] sm:$0xff] %vm1053_vm9, %v1012_v30  ;;  %1763 = vmatprep.mubr.msk.f32.mxu0 %vm1091_vm10, %v1072_v32 }
  0xe6   : > { %764 = vst.msk [vmem:[#allocation2 + $0x20] sm:$0xff] %vm759_vm6, %v720_v31  ;;  %638 = vrot.lane.b32.xlu1 %v1684_v27, %s2014_s6 }
  0xe7   : > { %543 = vrot.lane.b32.xlu0 %v2248_v35, %s2013_s5  ;;  %v1701_v35 = vld [vmem:[%s2126_s26 + $0xb2] sm:$0xff]  ;;  %s1601_s26 = sshll.u32 %s1993_s18, 4 }
  0xe8   : > { %v430_v36 = vpop.permute.xlu1 %429  ;;  %p241_p13 = scmp.lt.s32.totalorder %s1601_s26, 31 }
  0xe9   : > { %v335_v37 = vpop.permute.xlu0 %334  ;;  %472 = vst.msk [vmem:[#allocation2 + $0x30] sm:$0xff] %vm465_vm3, %v430_v36 }
  0xea   : > { %376 = vst.msk [vmem:[#allocation2 + $0x38] sm:$0xff] %vm368_vm2, %v335_v37  ;;  %1025 = vrot.lane.b32.xlu1 %v1700_v33, %s2018_s8  ;;  %s2735_s26 = smov (!%p241_p13, %s1601_s26), 31 }
  0xeb   : > { %930 = vrot.lane.b32.xlu0 %v1685_v34, %s2017_s23 }
  0xec   : > { %v820_v38 = vpop.permute.xlu1 %819  ;;  %v1073_v40 = vld [vmem:[#allocation2 + $0x18] sm:$0xff] }
  0xed   : > { %v722_v39 = vpop.permute.xlu0 %721  ;;  %864 = vst.msk [vmem:[#allocation2 + $0x20] sm:$0xff] %vm859_vm7, %v820_v38  ;;  %1764 = vmatmul.mubr.msk.f32.gmra.mrb[2].mxu0 %vm1091_vm10, %v1073_v40 }
  0xee   : > { %765 = vst.msk [vmem:[#allocation2 + $0x28] sm:$0xff] %vm759_vm6, %v722_v39  ;;  %640 = vrot.lane.b32.xlu1 %v1685_v34, %s2014_s6 }
  0xef   : > { %348 = vrot.lane.b32.xlu0 %v1684_v27, %s2012_s28 }
  0xf0   : > { %v530_v41 = vpop.permute.xlu1 %529 }
  0xf1   : > { %v432_v42 = vpop.permute.xlu0 %431  ;;  %572 = vst.msk [vmem:[#allocation2 + $0x30] sm:$0xff] %vm565_vm4, %v530_v41 }
  0xf2   : > { %473 = vst.msk [vmem:[#allocation2 + $0x38] sm:$0xff] %vm465_vm3, %v432_v42  ;;  %1027 = vrot.lane.b32.xlu1 %v1701_v35, %s2018_s8 }
  0xf3   : > { %735 = vrot.lane.b32.xlu0 %v1700_v33, %s2015_s7 }
  0xf4   : > { %v917_v43 = vpop.permute.xlu1 %916 }
  0xf5   : > { %v822_v44 = vpop.permute.xlu0 %821  ;;  %961 = vst.msk [vmem:[#allocation2 + $0x20] sm:$0xff] %vm956_vm8, %v917_v43 }
  0xf6   : > { %865 = vst.msk [vmem:[#allocation2 + $0x28] sm:$0xff] %vm859_vm7, %v822_v44  ;;  %445 = vrot.lane.b32.xlu1 %v1700_v33, %s2011_s27 }
  0xf7   : > { %350 = vrot.lane.b32.xlu0 %v1685_v34, %s2012_s28 }
  0xf8   : > { %v627_v46 = vpop.permute.xlu1 %626 }
  0xf9   : > { %v532_v47 = vpop.permute.xlu0 %531  ;;  %669 = vst.msk [vmem:[#allocation2 + $0x30] sm:$0xff] %vm662_vm5, %v627_v46 }
  0xfa   : > { %573 = vst.msk [vmem:[#allocation2 + $0x38] sm:$0xff] %vm565_vm4, %v532_v47  ;;  %835 = vrot.lane.b32.xlu1 %v1670_v45, %s2720_s13 }
  0xfb   : > { %737 = vrot.lane.b32.xlu0 %v1701_v35, %s2015_s7 }
  0xfc   : > { %v1014_v48 = vpop.permute.xlu1 %1013 }
  0xfd   : > { %v919_v49 = vpop.permute.xlu0 %918  ;;  %1058 = vst.msk [vmem:[#allocation2 + $0x20] sm:$0xff] %vm1053_vm9, %v1014_v48 }
  0xfe   : > { %962 = vst.msk [vmem:[#allocation2 + $0x28] sm:$0xff] %vm956_vm8, %v919_v49  ;;  %545 = vrot.lane.b32.xlu1 %v1670_v45, %s2013_s5 }
  0xff   : > { %447 = vrot.lane.b32.xlu0 %v1701_v35, %s2011_s27  ;;  %s1602_s27 = sshll.u32 %s2119_s10, 5  ;;  %s2613_s10 = sand.u32 1, %s1985_s16  }
 0x100   : > { %v629_v52 = vpop.permute.xlu1 %628  ;;  %s244_s28 = sadd.s32 %s1602_s27, %s2735_s26  ;;  %s226_s12 = scalar_lea.vmem [#allocation3], %s2613_s10 }
 0x101   : > { %v337_v53 = vpop.permute.xlu0 %336  ;;  %670 = vst.msk [vmem:[#allocation2 + $0x38] sm:$0xff] %vm662_vm5, %v629_v52  ;;  %s232_s26 = scalar_lea.vmem [#allocation5], %s2613_s10 }
 0x102   : > { %377 = vst.msk [vmem:[#allocation2 + $0x40] sm:$0xff] %vm368_vm2, %v337_v53  ;;  %932 = vrot.lane.b32.xlu1 %v1686_v51, %s2017_s23  ;;  %s1446_s27 = sshll.u32 %s232_s26, 4  ;;  %s2634_s27 = int_to_ptr.vmem [resolvable:$true] %s1446_s27 }
 0x103   : > { %837 = vrot.lane.b32.xlu0 %v1671_v50, %s2720_s13 }
 0x104   : > { %v1016_v54 = vpop.permute.xlu1 %1015  ;;  %v1074_v56 = vld [vmem:[#allocation2 + $0x20] sm:$0xff] }
 0x105   : > { %v724_v55 = vpop.permute.xlu0 %723  ;;  %1059 = vst.msk [vmem:[#allocation2 + $0x28] sm:$0xff] %vm1053_vm9, %v1016_v54  ;;  %1766 = vmatprep.mubr.msk.f32.mxu0 %vm1091_vm10, %v1074_v56 }
 0x106   : > { %766 = vst.msk [vmem:[#allocation2 + $0x30] sm:$0xff] %vm759_vm6, %v724_v55  ;;  %642 = vrot.lane.b32.xlu1 %v1686_v51, %s2014_s6 }
 0x107   : > { %547 = vrot.lane.b32.xlu0 %v1671_v50, %s2013_s5  ;;  %s1603_s5 = sshll.u32 %s244_s28, 3 }
 0x108   : > { %v434_v59 = vpop.permute.xlu1 %433 }
 0x109   : > { %v339_v60 = vpop.permute.xlu0 %338  ;;  %474 = vst.msk [vmem:[#allocation2 + $0x40] sm:$0xff] %vm465_vm3, %v434_v59 }
 0x10a   : > { %378 = vst.msk [vmem:[#allocation2 + $0x48] sm:$0xff] %vm368_vm2, %v339_v60  ;;  %1029 = vrot.lane.b32.xlu1 %v1702_v58, %s2018_s8 }
 0x10b   : > { %934 = vrot.lane.b32.xlu0 %v1687_v57, %s2017_s23 }
 0x10c   : > { %v824_v61 = vpop.permute.xlu1 %823  ;;  %v1075_v63 = vld [vmem:[#allocation2 + $0x28] sm:$0xff] }
 0x10d   : > { %v726_v62 = vpop.permute.xlu0 %725  ;;  %866 = vst.msk [vmem:[#allocation2 + $0x30] sm:$0xff] %vm859_vm7, %v824_v61  ;;  %1767 = vmatmul.mubr.msk.f32.gmra.mrb[4].mxu0 %vm1091_vm10, %v1075_v63 }
 0x10e   : > { %767 = vst.msk [vmem:[#allocation2 + $0x38] sm:$0xff] %vm759_vm6, %v726_v62  ;;  %739 = vrot.lane.b32.xlu1 %v1702_v58, %s2015_s7 }
 0x10f   : > { %644 = vrot.lane.b32.xlu0 %v1687_v57, %s2014_s6 }
 0x110   : > { %v534_v1 = vpop.permute.xlu1 %533 }
 0x111   : > { %v436_v2 = vpop.permute.xlu0 %435  ;;  %574 = vst.msk [vmem:[#allocation2 + $0x40] sm:$0xff] %vm565_vm4, %v534_v1 }
 0x112   : > { %475 = vst.msk [vmem:[#allocation2 + $0x48] sm:$0xff] %vm465_vm3, %v436_v2  ;;  %741 = vrot.lane.b32.xlu1 %v1703_v0, %s2015_s7 }
 0x113   : > { %1031 = vrot.lane.b32.xlu0 %v1703_v0, %s2018_s8 }
 0x114   : > { %v921_v5 = vpop.permute.xlu1 %920 }
 0x115   : > { %v826_v6 = vpop.permute.xlu0 %825  ;;  %963 = vst.msk [vmem:[#allocation2 + $0x30] sm:$0xff] %vm956_vm8, %v921_v5 }
 0x116   : > { %867 = vst.msk [vmem:[#allocation2 + $0x38] sm:$0xff] %vm859_vm7, %v826_v6  ;;  %841 = vrot.lane.b32.xlu1 %v1673_v4, %s2720_s13 }
 0x117   : > { %839 = vrot.lane.b32.xlu0 %v1672_v3, %s2720_s13  ;;  %s1431_s13 = sshll.u32 %s226_s12, 4  ;;  %s2626_s13 = int_to_ptr.vmem [resolvable:$true] %s1431_s13 }
 0x118   : > { %v631_v9 = vpop.permute.xlu1 %630 }
 0x119   : > { %v536_v10 = vpop.permute.xlu0 %535  ;;  %671 = vst.msk [vmem:[#allocation2 + $0x40] sm:$0xff] %vm662_vm5, %v631_v9 }
 0x11a   : > { %575 = vst.msk [vmem:[#allocation2 + $0x48] sm:$0xff] %vm565_vm4, %v536_v10  ;;  %938 = vrot.lane.b32.xlu1 %v1689_v8, %s2017_s23 }
 0x11b   : > { %936 = vrot.lane.b32.xlu0 %v1688_v7, %s2017_s23  ;;  %s1723_s23 = sshll.u32 %s1997_s19, 1 }
 0x11c   : > { %v1018_v13 = vpop.permute.xlu1 %1017  ;;  %s1424_s14 = sadd.s32 %s1993_s18, %s1723_s23  ;;  %s1883_s23 = scalar_lea.vmem %s2626_s13, 16 }
 0x11d   : > { %v923_v14 = vpop.permute.xlu0 %922  ;;  %1060 = vst.msk [vmem:[#allocation2 + $0x30] sm:$0xff] %vm1053_vm9, %v1018_v13  ;;  %s1724_s11 = sshll.u32 %s1424_s14, 4  ;;  %p1884_p0 = scmp.ne.s32.totalorder %s2626_s13, %s1883_s23 }
 0x11e   : > { %964 = vst.msk [vmem:[#allocation2 + $0x38] sm:$0xff] %vm956_vm8, %v923_v14  ;;  %1035 = vrot.lane.b32.xlu1 %v1705_v12, %s2018_s8  ;;  %s2632_s7 = scalar_lea.hbm %s2715_s4, %s1724_s11  ;;  %s2019_s14 = smov [#allocation3]  }
 0x11f   : > { %1033 = vrot.lane.b32.xlu0 %v1704_v11, %s2018_s8  ;;  %s2546_s8 = scalar_lea.vmem %s2713_s2, %s1603_s5  ;;  %s2624_s5 = scalar_lea.hbm %s2714_s3, %s1724_s11 }
 0x120   : > { %v633_v15 = vpop.permute.xlu1 %632  ;;  %p1885_p1 = pnand %p1884_p0, %p2099_p5  ;;  %s1887_s19 = sshll.u32 %s2019_s14, 4  ;;  %s1888_s19 = int_to_ptr.vmem [resolvable:$false] %s1887_s19 }
 0x121   : > { %v341_v16 = vpop.permute.xlu0 %340  ;;  %672 = vst.msk [vmem:[#allocation2 + $0x48] sm:$0xff] %vm662_vm5, %v633_v15  ;;  %s1889_s28 = scalar_lea.vmem %s1888_s19, 32  ;;  %p1890_p3 = scmp.lt.s32.totalorder %s2626_s13, %s1888_s19 }
 0x122   : > { %379 = vst.msk [vmem:[#allocation2 + $0x50] sm:$0xff] %vm368_vm2, %v341_v16  ;;  %p1886_p2 = pneg %p1885_p1  ;;  %p1891_p4 = scmp.lt.s32.totalorder %s1889_s28, %s1883_s23 }
 0x124   : > { %v1020_v17 = vpop.permute.xlu1 %1019  ;;  %v1076_v19 = vld [vmem:[#allocation2 + $0x30] sm:$0xff]  ;;  %p1892_p6 = por %p1891_p4, %p1890_p3 }
 0x125   : > { %v728_v18 = vpop.permute.xlu0 %727  ;;  %1061 = vst.msk [vmem:[#allocation2 + $0x38] sm:$0xff] %vm1053_vm9, %v1020_v17  ;;  %1769 = vmatprep.mubr.msk.f32.mxu0 %vm1091_vm10, %v1076_v19 }
 0x126   : > { %768 = vst.msk [vmem:[#allocation2 + $0x40] sm:$0xff] %vm759_vm6, %v728_v18  ;;  %p1893_p8 = pnand %p1892_p6, %p1886_p2 }
 0x128   : > { %v438_v20 = vpop.permute.xlu1 %437 }
 0x129   : > { %v343_v21 = vpop.permute.xlu0 %342  ;;  %476 = vst.msk [vmem:[#allocation2 + $0x50] sm:$0xff] %vm465_vm3, %v438_v20 }
 0x12a   : > { %380 = vst.msk [vmem:[#allocation2 + $0x58] sm:$0xff] %vm368_vm2, %v343_v21 }
 0x12c   : > { %v828_v22 = vpop.permute.xlu1 %827  ;;  %v1077_v24 = vld [vmem:[#allocation2 + $0x38] sm:$0xff] }
 0x12d   : > { %v730_v23 = vpop.permute.xlu0 %729  ;;  %868 = vst.msk [vmem:[#allocation2 + $0x40] sm:$0xff] %vm859_vm7, %v828_v22  ;;  %1770 = vmatmul.mubr.msk.f32.gmra.mrb[6].mxu0 %vm1091_vm10, %v1077_v24 }
 0x12e   : > { %769 = vst.msk [vmem:[#allocation2 + $0x48] sm:$0xff] %vm759_vm6, %v730_v23 }
 0x130   : > { %v538_v25 = vpop.permute.xlu1 %537 }
 0x131   : > { %v440_v26 = vpop.permute.xlu0 %439  ;;  %576 = vst.msk [vmem:[#allocation2 + $0x50] sm:$0xff] %vm565_vm4, %v538_v25 }
 0x132   : > { %477 = vst.msk [vmem:[#allocation2 + $0x58] sm:$0xff] %vm465_vm3, %v440_v26 }
 0x134   : > { %v925_v27 = vpop.permute.xlu1 %924 }
 0x135   : > { %v830_v28 = vpop.permute.xlu0 %829  ;;  %965 = vst.msk [vmem:[#allocation2 + $0x40] sm:$0xff] %vm956_vm8, %v925_v27 }
 0x136   : > { %869 = vst.msk [vmem:[#allocation2 + $0x48] sm:$0xff] %vm859_vm7, %v830_v28 }
 0x138   : > { %v635_v29 = vpop.permute.xlu1 %634 }
 0x139   : > { %v540_v30 = vpop.permute.xlu0 %539  ;;  %673 = vst.msk [vmem:[#allocation2 + $0x50] sm:$0xff] %vm662_vm5, %v635_v29 }
 0x13a   : > { %577 = vst.msk [vmem:[#allocation2 + $0x58] sm:$0xff] %vm565_vm4, %v540_v30 }
 0x13c   : > { %v1022_v31 = vpop.permute.xlu1 %1021 }
 0x13d   : > { %v927_v32 = vpop.permute.xlu0 %926  ;;  %1062 = vst.msk [vmem:[#allocation2 + $0x40] sm:$0xff] %vm1053_vm9, %v1022_v31 }
 0x13e   : > { %966 = vst.msk [vmem:[#allocation2 + $0x48] sm:$0xff] %vm956_vm8, %v927_v32 }
 0x140   : > { %v637_v33 = vpop.permute.xlu1 %636 }
 0x141   : > { %v345_v34 = vpop.permute.xlu0 %344  ;;  %674 = vst.msk [vmem:[#allocation2 + $0x58] sm:$0xff] %vm662_vm5, %v637_v33 }
 0x142   : > { %381 = vst.msk [vmem:[#allocation2 + $0x60] sm:$0xff] %vm368_vm2, %v345_v34 }
 0x144   : > { %v1024_v36 = vpop.permute.xlu1 %1023  ;;  %v1078_v38 = vld [vmem:[#allocation2 + $0x40] sm:$0xff] }
 0x145   : > { %v732_v37 = vpop.permute.xlu0 %731  ;;  %1063 = vst.msk [vmem:[#allocation2 + $0x48] sm:$0xff] %vm1053_vm9, %v1024_v36  ;;  %1772 = vmatprep.mubr.msk.f32.mxu1 %vm1091_vm10, %v1078_v38 }
 0x146   : > { %770 = vst.msk [vmem:[#allocation2 + $0x50] sm:$0xff] %vm759_vm6, %v732_v37 }
 0x148   : > { %v442_v39 = vpop.permute.xlu1 %441 }
 0x149   : > { %v347_v40 = vpop.permute.xlu0 %346  ;;  %478 = vst.msk [vmem:[#allocation2 + $0x60] sm:$0xff] %vm465_vm3, %v442_v39 }
 0x14a   : > { %382 = vst.msk [vmem:[#allocation2 + $0x68] sm:$0xff] %vm368_vm2, %v347_v40 }
 0x14c   : > { %v832_v35 = vpop.permute.xlu1 %831  ;;  %v1079_v42 = vld [vmem:[#allocation2 + $0x48] sm:$0xff] }
 0x14d   : > { %v734_v41 = vpop.permute.xlu0 %733  ;;  %870 = vst.msk [vmem:[#allocation2 + $0x50] sm:$0xff] %vm859_vm7, %v832_v35  ;;  %1773 = vmatmul.mubr.msk.f32.vlgmr.msra.gmra.mrb[0].mxu1 %vm1091_vm10, %v1079_v42 }
 0x14e   : > { %771 = vst.msk [vmem:[#allocation2 + $0x58] sm:$0xff] %vm759_vm6, %v734_v41 }
 0x150   : > { %v542_v43 = vpop.permute.xlu1 %541 }
 0x151   : > { %v444_v44 = vpop.permute.xlu0 %443  ;;  %578 = vst.msk [vmem:[#allocation2 + $0x60] sm:$0xff] %vm565_vm4, %v542_v43 }
 0x152   : > { %479 = vst.msk [vmem:[#allocation2 + $0x68] sm:$0xff] %vm465_vm3, %v444_v44 }
 0x154   : > { %v929_v45 = vpop.permute.xlu1 %928 }
 0x155   : > { %v834_v46 = vpop.permute.xlu0 %833  ;;  %967 = vst.msk [vmem:[#allocation2 + $0x50] sm:$0xff] %vm956_vm8, %v929_v45 }
 0x156   : > { %871 = vst.msk [vmem:[#allocation2 + $0x58] sm:$0xff] %vm859_vm7, %v834_v46 }
 0x158   : > { %v639_v47 = vpop.permute.xlu1 %638 }
 0x159   : > { %v544_v48 = vpop.permute.xlu0 %543  ;;  %675 = vst.msk [vmem:[#allocation2 + $0x60] sm:$0xff] %vm662_vm5, %v639_v47 }
 0x15a   : > { %579 = vst.msk [vmem:[#allocation2 + $0x68] sm:$0xff] %vm565_vm4, %v544_v48 }
 0x15c   : > { %v1026_v49 = vpop.permute.xlu1 %1025 }
 0x15d   : > { %v931_v50 = vpop.permute.xlu0 %930  ;;  %1064 = vst.msk [vmem:[#allocation2 + $0x50] sm:$0xff] %vm1053_vm9, %v1026_v49 }
 0x15e   : > { %968 = vst.msk [vmem:[#allocation2 + $0x58] sm:$0xff] %vm956_vm8, %v931_v50 }
 0x160   : > { %v641_v51 = vpop.permute.xlu1 %640 }
 0x161   : > { %v349_v52 = vpop.permute.xlu0 %348  ;;  %676 = vst.msk [vmem:[#allocation2 + $0x68] sm:$0xff] %vm662_vm5, %v641_v51 }
 0x162   : > { %383 = vst.msk [vmem:[#allocation2 + $0x70] sm:$0xff] %vm368_vm2, %v349_v52 }
 0x164   : > { %v1028_v53 = vpop.permute.xlu1 %1027  ;;  %v1080_v55 = vld [vmem:[#allocation2 + $0x50] sm:$0xff] }
 0x165   : > { %v736_v54 = vpop.permute.xlu0 %735  ;;  %1065 = vst.msk [vmem:[#allocation2 + $0x58] sm:$0xff] %vm1053_vm9, %v1028_v53  ;;  %1775 = vmatprep.mubr.msk.f32.mxu1 %vm1091_vm10, %v1080_v55 }
 0x166   : > { %772 = vst.msk [vmem:[#allocation2 + $0x60] sm:$0xff] %vm759_vm6, %v736_v54 }
 0x168   : > { %v446_v57 = vpop.permute.xlu1 %445 }
 0x169   : > { %v351_v56 = vpop.permute.xlu0 %350  ;;  %480 = vst.msk [vmem:[#allocation2 + $0x70] sm:$0xff] %vm465_vm3, %v446_v57 }
 0x16a   : > { %384 = vst.msk [vmem:[#allocation2 + $0x78] sm:$0xff] %vm368_vm2, %v351_v56 }
 0x16c   : > { %v836_v59 = vpop.permute.xlu1 %835  ;;  %v1081_v60 = vld [vmem:[#allocation2 + $0x58] sm:$0xff] }
 0x16d   : > { %v738_v58 = vpop.permute.xlu0 %737  ;;  %872 = vst.msk [vmem:[#allocation2 + $0x60] sm:$0xff] %vm859_vm7, %v836_v59  ;;  %1776 = vmatmul.mubr.msk.f32.gmra.mrb[2].mxu1 %vm1091_vm10, %v1081_v60 }
 0x16e   : > { %773 = vst.msk [vmem:[#allocation2 + $0x68] sm:$0xff] %vm759_vm6, %v738_v58 }
 0x170   : > { %v546_v62 = vpop.permute.xlu1 %545 }
 0x171   : > { %v448_v61 = vpop.permute.xlu0 %447  ;;  %580 = vst.msk [vmem:[#allocation2 + $0x70] sm:$0xff] %vm565_vm4, %v546_v62 }
 0x172   : > { %481 = vst.msk [vmem:[#allocation2 + $0x78] sm:$0xff] %vm465_vm3, %v448_v61 }
 0x174   : > { %v933_v0 = vpop.permute.xlu1 %932 }
 0x175   : > { %v838_v63 = vpop.permute.xlu0 %837  ;;  %969 = vst.msk [vmem:[#allocation2 + $0x60] sm:$0xff] %vm956_vm8, %v933_v0 }
 0x176   : > { %873 = vst.msk [vmem:[#allocation2 + $0x68] sm:$0xff] %vm859_vm7, %v838_v63 }
 0x178   : > { %v643_v2 = vpop.permute.xlu1 %642 }
 0x179   : > { %v548_v1 = vpop.permute.xlu0 %547  ;;  %677 = vst.msk [vmem:[#allocation2 + $0x70] sm:$0xff] %vm662_vm5, %v643_v2 }
 0x17a   : > { %581 = vst.msk [vmem:[#allocation2 + $0x78] sm:$0xff] %vm565_vm4, %v548_v1 }
 0x17c   : > { %v1030_v4 = vpop.permute.xlu1 %1029 }
 0x17d   : > { %v935_v3 = vpop.permute.xlu0 %934  ;;  %1066 = vst.msk [vmem:[#allocation2 + $0x60] sm:$0xff] %vm1053_vm9, %v1030_v4 }
 0x17e   : > { %970 = vst.msk [vmem:[#allocation2 + $0x68] sm:$0xff] %vm956_vm8, %v935_v3 }
 0x180   : > { %v740_v6 = vpop.permute.xlu1 %739 }
 0x181   : > { %v645_v5 = vpop.permute.xlu0 %644  ;;  %774 = vst.msk [vmem:[#allocation2 + $0x70] sm:$0xff] %vm759_vm6, %v740_v6 }
 0x182   : > { %678 = vst.msk [vmem:[#allocation2 + $0x78] sm:$0xff] %vm662_vm5, %v645_v5 }
 0x184   : > { %v742_v8 = vpop.permute.xlu1 %741  ;;  %v1082_v9 = vld [vmem:[#allocation2 + $0x60] sm:$0xff] }
 0x185   : > { %v1032_v7 = vpop.permute.xlu0 %1031  ;;  %775 = vst.msk [vmem:[#allocation2 + $0x78] sm:$0xff] %vm759_vm6, %v742_v8  ;;  %1778 = vmatprep.mubr.msk.f32.mxu1 %vm1091_vm10, %v1082_v9 }
 0x186   : > { %1067 = vst.msk [vmem:[#allocation2 + $0x68] sm:$0xff] %vm1053_vm9, %v1032_v7 }
 0x188   : > { %v842_v11 = vpop.permute.xlu1 %841 }
 0x189   : > { %v840_v10 = vpop.permute.xlu0 %839  ;;  %875 = vst.msk [vmem:[#allocation2 + $0x78] sm:$0xff] %vm859_vm7, %v842_v11 }
 0x18a   : > { %874 = vst.msk [vmem:[#allocation2 + $0x70] sm:$0xff] %vm859_vm7, %v840_v10 }
 0x18c   : > { %v939_v13 = vpop.permute.xlu1 %938 }
 0x18d   : > { %v937_v12 = vpop.permute.xlu0 %936  ;;  %v1083_v14 = vld [vmem:[#allocation2 + $0x68] sm:$0xff]  ;;  %972 = vst.msk [vmem:[#allocation2 + $0x78] sm:$0xff] %vm956_vm8, %v939_v13 }
 0x18e   : > { %971 = vst.msk [vmem:[#allocation2 + $0x70] sm:$0xff] %vm956_vm8, %v937_v12  ;;  %1779 = vmatmul.mubr.msk.f32.gmra.mrb[4].mxu1 %vm1091_vm10, %v1083_v14 }
 0x190   : > { %v1036_v16 = vpop.permute.xlu1 %1035 }
 0x191   : > { %v1034_v15 = vpop.permute.xlu0 %1033  ;;  %1069 = vst.msk [vmem:[#allocation2 + $0x78] sm:$0xff] %vm1053_vm9, %v1036_v16 }
 0x192   : > { %1068 = vst.msk [vmem:[#allocation2 + $0x70] sm:$0xff] %vm1053_vm9, %v1034_v15 }
 0x198   : > { %v1085_v18 = vld [vmem:[#allocation2 + $0x78] sm:$0xff] }
 0x199   : > { %v1084_v17 = vld [vmem:[#allocation2 + $0x70] sm:$0xff] }
 0x19a   : > { %1781 = vmatprep.mubr.msk.f32.mxu1 %vm1091_vm10, %v1084_v17 }
 0x19b   : > { %1782 = vmatmul.mubr.msk.f32.gmra.mrb[6].mxu1 %vm1091_vm10, %v1085_v18 }
 0x1a0   : > { %v1762_v19 = vpop.f32.mrb[0].mxu0 }
 0x1a1   : > { %1291 = vst.msk [vmem:[%s2546_s8 + $0x8] sm:$0xff] %vm1289_vm11, %v1762_v19  ;;  %v1307_v20 = vsel %vm1289_vm11, %v1762_v19, 0.0  ;;  %v1346_v21 = vmul.f32 %v1762_v19, %v1762_v19  ;;  %v1210_v22 = vpop.f32.mrb[1].mxu0 }
 0x1a2   : > { %1290 = vst.msk [vmem:[%s2546_s8] sm:$0xff] %vm1289_vm11, %v1210_v22  ;;  %v1306_v23 = vsel %vm1289_vm11, %v1210_v22, 0.0  ;;  %v1345_v24 = vmul.f32 %v1210_v22, %v1210_v22 }
 0x1a3   : > { %v1362_v25 = vsel %vm1289_vm11, %v1346_v21, 0.0  ;;  %v1308_v26 = vadd.f32 %v1307_v20, %v1306_v23 }
 0x1a4   : > { %v1361_v27 = vsel %vm1289_vm11, %v1345_v24, 0.0 }
 0x1a5   : > { %v1363_v28 = vadd.f32 %v1362_v25, %v1361_v27 }
 0x1c0   : > { %v1765_v29 = vpop.f32.mrb[2].mxu0 }
 0x1c1   : > { %1293 = vst.msk [vmem:[%s2546_s8 + $0x18] sm:$0xff] %vm1289_vm11, %v1765_v29  ;;  %v1220_v30 = vpop.f32.mrb[3].mxu0  ;;  %v1348_v31 = vmul.f32 %v1765_v29, %v1765_v29  ;;  %v1311_v36 = vsel %vm1289_vm11, %v1765_v29, 0.0 }
 0x1c2   : > { %1292 = vst.msk [vmem:[%s2546_s8 + $0x10] sm:$0xff] %vm1289_vm11, %v1220_v30  ;;  %v1309_v32 = vsel %vm1289_vm11, %v1220_v30, 0.0  ;;  %v1347_v33 = vmul.f32 %v1220_v30, %v1220_v30 }
 0x1c3   : > { %v1310_v34 = vadd.f32 %v1309_v32, %v1308_v26  ;;  %v1366_v40 = vsel %vm1289_vm11, %v1348_v31, 0.0 }
 0x1c4   : > { %v1364_v37 = vsel %vm1289_vm11, %v1347_v33, 0.0 }
 0x1c5   : > { %v1365_v38 = vadd.f32 %v1364_v37, %v1363_v28  ;;  %v1312_v39 = vadd.f32 %v1311_v36, %v1310_v34 }
 0x1c7   : > { %v1367_v35 = vadd.f32 %v1366_v40, %v1365_v38 }
 0x1e0   : > { %v1768_v41 = vpop.f32.mrb[4].mxu0 }
 0x1e1   : > { %1295 = vst.msk [vmem:[%s2546_s8 + $0x28] sm:$0xff] %vm1289_vm11, %v1768_v41  ;;  %v1230_v42 = vpop.f32.mrb[5].mxu0  ;;  %v1350_v43 = vmul.f32 %v1768_v41, %v1768_v41  ;;  %v1315_v47 = vsel %vm1289_vm11, %v1768_v41, 0.0 }
 0x1e2   : > { %1294 = vst.msk [vmem:[%s2546_s8 + $0x20] sm:$0xff] %vm1289_vm11, %v1230_v42  ;;  %v1313_v44 = vsel %vm1289_vm11, %v1230_v42, 0.0  ;;  %v1349_v45 = vmul.f32 %v1230_v42, %v1230_v42 }
 0x1e3   : > { %v1314_v46 = vadd.f32 %v1313_v44, %v1312_v39  ;;  %v1370_v51 = vsel %vm1289_vm11, %v1350_v43, 0.0 }
 0x1e4   : > { %v1368_v48 = vsel %vm1289_vm11, %v1349_v45, 0.0 }
 0x1e5   : > { %v1369_v49 = vadd.f32 %v1368_v48, %v1367_v35  ;;  %v1316_v50 = vadd.f32 %v1315_v47, %v1314_v46 }
 0x1e7   : > { %v1371_v52 = vadd.f32 %v1370_v51, %v1369_v49 }
 0x200   : > { %v1771_v53 = vpop.f32.mrb[6].mxu0 }
 0x201   : > { %1297 = vst.msk [vmem:[%s2546_s8 + $0x38] sm:$0xff] %vm1289_vm11, %v1771_v53  ;;  %v1240_v54 = vpop.f32.mrb[7].mxu0  ;;  %v1352_v55 = vmul.f32 %v1771_v53, %v1771_v53  ;;  %v1319_v59 = vsel %vm1289_vm11, %v1771_v53, 0.0 }
 0x202   : > { %1296 = vst.msk [vmem:[%s2546_s8 + $0x30] sm:$0xff] %vm1289_vm11, %v1240_v54  ;;  %v1317_v56 = vsel %vm1289_vm11, %v1240_v54, 0.0  ;;  %v1351_v57 = vmul.f32 %v1240_v54, %v1240_v54 }
 0x203   : > { %v1318_v58 = vadd.f32 %v1317_v56, %v1316_v50  ;;  %v1374_v63 = vsel %vm1289_vm11, %v1352_v55, 0.0 }
 0x204   : > { %v1372_v60 = vsel %vm1289_vm11, %v1351_v57, 0.0 }
 0x205   : > { %v1320_v61 = vadd.f32 %v1319_v59, %v1318_v58  ;;  %v1373_v62 = vadd.f32 %v1372_v60, %v1371_v52 }
 0x207   : > { %v1375_v0 = vadd.f32 %v1374_v63, %v1373_v62 }
 0x220   : > { %v1774_v1 = vpop.f32.mrb[0].mxu1 }
 0x221   : > { %1299 = vst.msk [vmem:[%s2546_s8 + $0x48] sm:$0xff] %vm1289_vm11, %v1774_v1  ;;  %v1250_v2 = vpop.f32.mrb[1].mxu1  ;;  %v1354_v3 = vmul.f32 %v1774_v1, %v1774_v1  ;;  %v1323_v7 = vsel %vm1289_vm11, %v1774_v1, 0.0 }
 0x222   : > { %1298 = vst.msk [vmem:[%s2546_s8 + $0x40] sm:$0xff] %vm1289_vm11, %v1250_v2  ;;  %v1321_v4 = vsel %vm1289_vm11, %v1250_v2, 0.0  ;;  %v1353_v5 = vmul.f32 %v1250_v2, %v1250_v2 }
 0x223   : > { %v1322_v6 = vadd.f32 %v1321_v4, %v1320_v61  ;;  %v1378_v11 = vsel %vm1289_vm11, %v1354_v3, 0.0 }
 0x224   : > { %v1376_v8 = vsel %vm1289_vm11, %v1353_v5, 0.0 }
 0x225   : > { %v1377_v9 = vadd.f32 %v1376_v8, %v1375_v0  ;;  %v1324_v10 = vadd.f32 %v1323_v7, %v1322_v6 }
 0x227   : > { %v1379_v12 = vadd.f32 %v1378_v11, %v1377_v9 }
 0x240   : > { %v1777_v13 = vpop.f32.mrb[2].mxu1 }
 0x241   : > { %1301 = vst.msk [vmem:[%s2546_s8 + $0x58] sm:$0xff] %vm1289_vm11, %v1777_v13  ;;  %v1260_v14 = vpop.f32.mrb[3].mxu1  ;;  %v1356_v15 = vmul.f32 %v1777_v13, %v1777_v13  ;;  %v1327_v19 = vsel %vm1289_vm11, %v1777_v13, 0.0 }
 0x242   : > { %1300 = vst.msk [vmem:[%s2546_s8 + $0x50] sm:$0xff] %vm1289_vm11, %v1260_v14  ;;  %v1325_v16 = vsel %vm1289_vm11, %v1260_v14, 0.0  ;;  %v1355_v17 = vmul.f32 %v1260_v14, %v1260_v14 }
 0x243   : > { %v1326_v18 = vadd.f32 %v1325_v16, %v1324_v10  ;;  %v1382_v23 = vsel %vm1289_vm11, %v1356_v15, 0.0 }
 0x244   : > { %v1380_v20 = vsel %vm1289_vm11, %v1355_v17, 0.0 }
 0x245   : > { %v1381_v21 = vadd.f32 %v1380_v20, %v1379_v12  ;;  %v1328_v22 = vadd.f32 %v1327_v19, %v1326_v18 }
 0x247   : > { %v1383_v24 = vadd.f32 %v1382_v23, %v1381_v21 }
 0x261   : > { %v1780_v25 = vpop.f32.mrb[4].mxu1 }
 0x262   : > { %1303 = vst.msk [vmem:[%s2546_s8 + $0x68] sm:$0xff] %vm1289_vm11, %v1780_v25  ;;  %v1270_v26 = vpop.f32.mrb[5].mxu1  ;;  %v1358_v27 = vmul.f32 %v1780_v25, %v1780_v25  ;;  %v1331_v31 = vsel %vm1289_vm11, %v1780_v25, 0.0 }
 0x263   : > { %1302 = vst.msk [vmem:[%s2546_s8 + $0x60] sm:$0xff] %vm1289_vm11, %v1270_v26  ;;  %v1329_v28 = vsel %vm1289_vm11, %v1270_v26, 0.0  ;;  %v1357_v29 = vmul.f32 %v1270_v26, %v1270_v26 }
 0x264   : > { %v1330_v30 = vadd.f32 %v1329_v28, %v1328_v22  ;;  %v1386_v36 = vsel %vm1289_vm11, %v1358_v27, 0.0 }
 0x265   : > { %v1384_v32 = vsel %vm1289_vm11, %v1357_v29, 0.0 }
 0x266   : > { %v1385_v33 = vadd.f32 %v1384_v32, %v1383_v24  ;;  %v1332_v34 = vadd.f32 %v1331_v31, %v1330_v30 }
 0x268   : > { %v1387_v37 = vadd.f32 %v1386_v36, %v1385_v33 }
 0x26e   : > { %v1783_v38 = vpop.f32.mrb[6].mxu1 }
 0x26f   : > { %1305 = vst.msk [vmem:[%s2546_s8 + $0x78] sm:$0xff] %vm1289_vm11, %v1783_v38  ;;  %v1280_v39 = vpop.f32.mrb[7].mxu1  ;;  %v1360_v40 = vmul.f32 %v1783_v38, %v1783_v38  ;;  %v1335_v43 = vsel %vm1289_vm11, %v1783_v38, 0.0 }
 0x270   : > { %1304 = vst.msk [vmem:[%s2546_s8 + $0x70] sm:$0xff] %vm1289_vm11, %v1280_v39  ;;  %v1333_v35 = vsel %vm1289_vm11, %v1280_v39, 0.0  ;;  %v1359_v41 = vmul.f32 %v1280_v39, %v1280_v39  ;;  %s1409_s8 = scalar_lea.sflag [#allocation4], %s2613_s10 }
 0x271   : > { %v1334_v42 = vadd.f32 %v1333_v35, %v1332_v34  ;;  %v1390_v47 = vsel %vm1289_vm11, %v1360_v40, 0.0 }
 0x272   : > { %v1388_v44 = vsel %vm1289_vm11, %v1359_v41, 0.0 }
 0x273   : > { %v1336_v45 = vadd.f32 %v1335_v43, %v1334_v42  ;;  %v1389_v46 = vadd.f32 %v1388_v44, %v1387_v37 }
 0x275   : > { %v1337_v48 = vrot.slane %v1336_v45, 4  ;;  %v1391_v49 = vadd.f32 %v1390_v47, %v1389_v46 }
 0x277   : > { %v1338_v50 = vadd.f32 %v1337_v48, %v1336_v45  ;;  %v1392_v51 = vrot.slane %v1391_v49, 4 }
 0x279   : > { %v1339_v52 = vrot.slane %v1338_v50, 2  ;;  %v1393_v53 = vadd.f32 %v1392_v51, %v1391_v49 }
 0x27b   : > { %v1340_v54 = vadd.f32 %v1339_v52, %v1338_v50  ;;  %v1394_v55 = vrot.slane %v1393_v53, 2 }
 0x27d   : > { %v1341_v56 = vrot.slane %v1340_v54, 1  ;;  %v1395_v57 = vadd.f32 %v1394_v55, %v1393_v53 }
 0x27f   : > { %v1342_v58 = vadd.f32 %v1341_v56, %v1340_v54  ;;  %v1396_v59 = vrot.slane %v1395_v57, 1 }
 0x281   : > { %1344 = vst.msk [vmem:[%s226_s12] sm:$0x1] %vm1343_vm12, %v1342_v58  ;;  %v1397_v60 = vadd.f32 %v1396_v59, %v1395_v57 }
 0x282   : > { %1896 = shalt.err (!%p1893_p8)
}
 0x283   : > { %s1897_s11 = scalar_lea.hbm %s2624_s5, 16  ;;  %s1901_s6 = scalar_lea.hbm %s2714_s3, 64 }
 0x284   : > { %p1898_p9 = scmp.ne.s32.totalorder %s2624_s5, %s1897_s11  ;;  %p1902_p12 = scmp.lt.u32.totalorder %s2624_s5, %s2714_s3 }
 0x285   : > { %p1903_p13 = scmp.lt.u32.totalorder %s1901_s6, %s1897_s11  ;;  %p1905_p1 = scmp.lt.u32.totalorder %s1897_s11, %s2624_s5 }
 0x286   : > { %p1899_p10 = pnand %p1898_p9, %p2099_p5 }
 0x287   : > { %p1904_p0 = por %p1903_p13, %p1902_p12 }
 0x288   : > { %p1900_p11 = pneg %p1899_p10 }
 0x289   : > { %p1906_p2 = por %p1905_p1, %p1904_p0 }
 0x28b   : > { %p1907_p3 = pnand %p1906_p2, %p1900_p11 }
 0x28d   : > { %1910 = shalt.err (!%p1907_p3)
}
 0x28e   : > { %1799 = dma.vmem_to_hbm [thread:$0]  (%p2099_p5), %s2626_s13, 16, %s2624_s5, %s1409_s8   ;;  %1398 = vst.msk [vmem:[%s232_s26] sm:$0x1] %vm1343_vm12, %v1397_v60 }
 0x28f   : > { %s1413_s23 = scalar_lea.sflag [#allocation6], %s2613_s10  ;;  %s1911_s28 = scalar_lea.vmem %s2634_s27, 16 }
 0x290   : > { %p1912_p4 = scmp.ne.s32.totalorder %s2634_s27, %s1911_s28  ;;  %s2020_s11 = smov [#allocation5]  }
 0x291   : > { %s1915_s12 = sshll.u32 %s2020_s11, 4  ;;  %s1916_s12 = int_to_ptr.vmem [resolvable:$false] %s1915_s12 }
 0x292   : > { %p1913_p6 = pnand %p1912_p4, %p2099_p5  ;;  %s1917_s18 = scalar_lea.vmem %s1916_s12, 32 }
 0x293   : > { %p1918_p9 = scmp.lt.s32.totalorder %s2634_s27, %s1916_s12  ;;  %p1919_p10 = scmp.lt.s32.totalorder %s1917_s18, %s1911_s28 }
 0x294   : > { %p1914_p8 = pneg %p1913_p6 }
 0x295   : > { %p1920_p11 = por %p1919_p10, %p1918_p9 }
 0x297   : > { %p1921_p12 = pnand %p1920_p11, %p1914_p8 }
 0x299   : > { %1924 = shalt.err (!%p1921_p12)
}
 0x29a   : > { %s1925_s10 = scalar_lea.hbm %s2632_s7, 16  ;;  %s1929_s5 = scalar_lea.hbm %s2715_s4, 64 }
 0x29b   : > { %p1926_p13 = scmp.ne.s32.totalorder %s2632_s7, %s1925_s10  ;;  %p1930_p2 = scmp.lt.u32.totalorder %s2632_s7, %s2715_s4 }
 0x29c   : > { %p1931_p3 = scmp.lt.u32.totalorder %s1929_s5, %s1925_s10  ;;  %p1933_p6 = scmp.lt.u32.totalorder %s1925_s10, %s2632_s7 }
 0x29d   : > { %p1927_p0 = pnand %p1926_p13, %p2099_p5 }
 0x29e   : > { %p1932_p4 = por %p1931_p3, %p1930_p2 }
 0x29f   : > { %p1928_p1 = pneg %p1927_p0 }
 0x2a0   : > { %p1934_p8 = por %p1933_p6, %p1932_p4 }
 0x2a2   : > { %p1935_p9 = pnand %p1934_p8, %p1928_p1 }
 0x2a4   : > { %1938 = shalt.err (!%p1935_p9)
}
 0x2a5   : > { %1800 = dma.vmem_to_hbm [thread:$0]  (%p2099_p5), %s2634_s27, 16, %s2632_s7, %s1413_s23  }
 0x2a6 PF: > { %p1810_p10 = scmp.ge.s32.totalorder %s2009_s22, 2  ;;  %s1470_s14 = sand.u32 1, %s1981_s15  }
 0x2a7   : > { %s1471_s19 = scalar_lea.sflag [#allocation4], %s1470_s14 }
 0x2a8   : > { %p1804_p11 = pnand %p1810_p10, %p2105_p7 }
 0x2aa   : > { %1972 = dma.done.wait (!%p1804_p11), %s1471_s19, 16  }
 0x2ab   : > { %1974 = vsyncadd (!%p1804_p11), %s1471_s19, 4294967280  ;;  %s1479_s28 = scalar_lea.sflag [#allocation6], %s1470_s14 }
 0x2ac   : > { %1976 = dma.done.wait (!%p1804_p11), %s1479_s28, 16  }
 0x2ad   : > { %1978 = vsyncadd (!%p1804_p11), %s1479_s28, 4294967280  ;;  %s21_s22 = sadd.s32 1, %s2009_s22   ;;  %s2721_s15 = smov %s1985_s16 }
 0x2ae   : > { %p18_p12 = scmp.ge.s32.totalorder %s21_s22, 6   ;;  %s2722_s16 = smov %s1989_s17 }
 0x2af   : > { %s2723_s17 = smov %s2115_s9  ;;  %s2724_s18 = smov %s2001_s20 }
 0x2b0   : > { %s2725_s19 = smov %s2005_s21  ;;  %s2726_s20 = smov %s2729_s24 }
 0x2b1   : > { %s2727_s21 = smov %s2733_s25  ;;  %20 = sbr.rel (!%p18_p12) target bundleno = 7 (0x7), region = 95 }
 0x2b8   :  { %1483 = vsyncpa [#allocation4], 1 }
 0x2b9   :  { %1485 = vsyncpa [#allocation4 + $0x1], 1 }
 0x2ba   :  { %1486 = vsyncpa [#allocation6], 1 }
 0x2bb   :  { %1488 = vsyncpa [#allocation6 + $0x1], 1 }

</bundles_post_ra>
